<compile_context>
chip_gen: v6e
topology: v6e:2x2x1
jax: 0.10.0
libtpu: 0.0.40
codegen_flags: <defaults>
</compile_context>

<pallas_src>
import jax
import jax.numpy as jnp
from jax.experimental import pallas as pl
from jax.experimental.pallas import tpu as pltpu


def _round_up(x: int, m: int) -> int:
    return (x + m - 1) // m * m


def cbow_kernel(x_ref, w1_ref, b1_ref, w2_ref, b2_ref, out_ref,
                h_ref, m_ref, l_ref, lse_ref):
    """Grid = (batch tiles, pass in {0: stats, 1: write}, vocab tiles).

    x_ref  : (B_t, CEp)    bf16  current batch tile of flattened embeddings
    w1_ref : (CEp, H)      bf16  full linear1 weight (VMEM resident)
    b1_ref : (1, H)        f32
    w2_ref : (H, Vp)       bf16  full linear2 weight (VMEM resident)
    b2_ref : (1, Vp)       f32   padded cols carry -1e30
    out_ref: (B_t, V_t)    f32   normalized log-probs for this vocab tile
    h_ref  : (B_t, H)      bf16  scratch: relu(x @ W1 + b1)
    m_ref  : (B_t, 1)      f32   scratch: running max of logits
    l_ref  : (B_t, 1)      f32   scratch: running sum of exp(logits - max)
    lse_ref: (B_t, 1)      f32   scratch: log-sum-exp after pass 0
    """
    p = pl.program_id(1)
    v = pl.program_id(2)
    nv = pl.num_programs(2)
    v_tile = out_ref.shape[-1]

    # ---- once per batch tile (first grid step): hidden layer + stats init.
    @pl.when((p == 0) & (v == 0))
    def _init():
        h = jnp.dot(x_ref[...], w1_ref[...],
                    preferred_element_type=jnp.float32)
        h = jnp.maximum(h + b1_ref[...], 0.0)
        h_ref[...] = h.astype(h_ref.dtype)
        m_ref[...] = jnp.full(m_ref.shape, -jnp.inf, dtype=m_ref.dtype)
        l_ref[...] = jnp.zeros(l_ref.shape, dtype=l_ref.dtype)

    # ---- logits for this vocab tile from the VMEM-resident W2 / b2
    #      (128-aligned lane slice, bf16 MXU, f32 accumulate).
    off = pl.multiple_of(v * v_tile, 128)
    logits = jnp.dot(h_ref[...], w2_ref[:, pl.ds(off, v_tile)],
                     preferred_element_type=jnp.float32)
    logits = logits + b2_ref[:, pl.ds(off, v_tile)]

    # ---- pass 0: online log-sum-exp statistics only.
    @pl.when(p == 0)
    def _stats():
        m_prev = m_ref[...]
        m_new = jnp.maximum(m_prev, jnp.max(logits, axis=-1, keepdims=True))
        l_ref[...] = (l_ref[...] * jnp.exp(m_prev - m_new)
                      + jnp.sum(jnp.exp(logits - m_new), axis=-1,
                                keepdims=True))
        m_ref[...] = m_new

    @pl.when((p == 0) & (v == nv - 1))
    def _finish_stats():
        lse_ref[...] = m_ref[...] + jnp.log(l_ref[...])

    # ---- pass 1: dense, lane-wide write of normalized log-probs.
    @pl.when(p == 1)
    def _write():
        out_ref[...] = (logits - lse_ref[...]).astype(out_ref.dtype)


def cbow_forward(inputs, embedding_table, w1, b1, w2, b2,
                 *, b_tile=128, v_tile=512,
                 vmem_limit_bytes=64 * 1024 * 1024):
    """inputs: (B, C) int32 token ids.  Returns (B, vocab) f32 log-probs.

    Defaults target v5e/v6e (128 MiB VMEM).  On v7x (64 MiB VMEM, 2 TCs) use
    a lower vmem_limit_bytes (<= ~48 MiB) and keep nb >= 2 for large batches.
    """
    batch, context = inputs.shape
    vocab, emb_dim = embedding_table.shape
    ce = context * emb_dim
    hidden = w1.shape[1]
    assert hidden % 128 == 0, "module fixes hidden=128 (lane aligned)"

    # Embedding gather + flatten (pure indexing) stays in XLA glue; the hot
    # path (both matmuls, ReLU, log-softmax) is one fused Pallas kernel.
    # TODO(synk): fuse this row-gather into the kernel (scalar-prefetched ids +
    # per-row async DMA); Pallas TPU has no clean bulk-gather primitive.
    x = embedding_table[inputs].reshape(batch, ce).astype(jnp.bfloat16)

    # Effective tiles: lane/sublane aligned, but never larger than the
    # (aligned) problem so tiny shapes are not over-padded.
    ce_p = _round_up(ce, 128)
    v_tile = min(v_tile, _round_up(vocab, 128))
    v_p = _round_up(vocab, v_tile)
    nv = v_p // v_tile
    # NOTE(v7x): batch axis is "parallel" -> keep nb >= 2 for big batches so
    # both TensorCores are busy; for tiny batches one tile is fine.
    b_tile = _round_up(min(b_tile, _round_up(batch, 8)), 8)
    b_p = _round_up(batch, b_tile)
    nb = b_p // b_tile

    # The last vocab tile always contains >= 1 real column (v_p - vocab <
    # v_tile), so the -1e30 bias on padded columns can never win the running
    # max and its exp() underflows to exactly 0 in the normalizer.
    assert v_p - vocab < v_tile

    x_p = jnp.pad(x, ((0, b_p - batch), (0, ce_p - ce)))
    w1_p = jnp.pad(w1.astype(jnp.bfloat16), ((0, ce_p - ce), (0, 0)))
    b1_p = b1.reshape(1, hidden).astype(jnp.float32)
    w2_p = jnp.pad(w2.astype(jnp.bfloat16), ((0, 0), (0, v_p - vocab)))
    b2_p = jnp.pad(b2.reshape(1, vocab).astype(jnp.float32),
                   ((0, 0), (0, v_p - vocab)), constant_values=-1e30)

    out = pl.pallas_call(
        cbow_kernel,
        out_shape=jax.ShapeDtypeStruct((b_p, v_p), jnp.float32),
        grid_spec=pltpu.PrefetchScalarGridSpec(
            num_scalar_prefetch=0,
            grid=(nb, 2, nv),
            in_specs=[
                pl.BlockSpec((b_tile, ce_p), lambda b, p, v: (b, 0)),   # x
                pl.BlockSpec((ce_p, hidden), lambda b, p, v: (0, 0)),   # W1
                pl.BlockSpec((1, hidden), lambda b, p, v: (0, 0)),      # b1
                pl.BlockSpec((hidden, v_p), lambda b, p, v: (0, 0)),    # W2
                pl.BlockSpec((1, v_p), lambda b, p, v: (0, 0)),         # b2
            ],
            # Pass 0 parks the output on block (b, 0); pass 1 walks (b, v).
            # Each output block's visits are consecutive, so it is written
            # exactly once (during pass 1) and written back exactly once.
            out_specs=pl.BlockSpec((b_tile, v_tile),
                                   lambda b, p, v: (b, p * v)),
            scratch_shapes=[
                pltpu.VMEM((b_tile, hidden), jnp.bfloat16),  # h
                pltpu.VMEM((b_tile, 1), jnp.float32),        # running max
                pltpu.VMEM((b_tile, 1), jnp.float32),        # running sum-exp
                pltpu.VMEM((b_tile, 1), jnp.float32),        # log-sum-exp
            ],
        ),
        compiler_params=pltpu.CompilerParams(
            dimension_semantics=("parallel", "arbitrary", "arbitrary"),
            vmem_limit_bytes=vmem_limit_bytes,
        ),
    )(x_p, w1_p, b1_p, w2_p, b2_p)

    return out[:batch, :vocab]


if __name__ == "__main__":
    # Small shapes consistent with the module; vocab/batch/C*E deliberately
    # not multiples of the tile sizes so padding + masking paths (multiple
    # batch tiles, multiple vocab tiles, padded lanes/rows) are exercised.
    vocab_size = 1000
    embedding_dim = 20
    context_size = 4            # C*E = 80 -> padded to 128
    hidden = 128
    batch = 200                 # -> 2 batch tiles of 128 (56 padded rows)

    key = jax.random.PRNGKey(0)
    k_emb, k_w1, k_b1, k_w2, k_b2, k_in = jax.random.split(key, 6)

    embedding_table = jax.random.normal(
        k_emb, (vocab_size, embedding_dim), dtype=jnp.float32)
    w1 = jax.random.normal(
        k_w1, (context_size * embedding_dim, hidden), dtype=jnp.float32) * 0.05
    b1 = jax.random.normal(k_b1, (hidden,), dtype=jnp.float32) * 0.05
    w2 = jax.random.normal(k_w2, (hidden, vocab_size), dtype=jnp.float32) * 0.05
    b2 = jax.random.normal(k_b2, (vocab_size,), dtype=jnp.float32) * 0.05

    inputs = jax.random.randint(
        k_in, (batch, context_size), 0, vocab_size, dtype=jnp.int32)

    log_probs = jax.jit(cbow_forward)(inputs, embedding_table, w1, b1, w2, b2)
    jax.block_until_ready(log_probs)

    # Pure-JAX reference with the same bf16 matmul precision policy.
    x_r = embedding_table[inputs].reshape(batch, -1).astype(jnp.bfloat16)
    h_r = jnp.maximum(
        jnp.dot(x_r, w1.astype(jnp.bfloat16),
                preferred_element_type=jnp.float32) + b1, 0.0)
    logits_r = jnp.dot(h_r.astype(jnp.bfloat16), w2.astype(jnp.bfloat16),
                       preferred_element_type=jnp.float32) + b2
    ref = jax.nn.log_softmax(logits_r, axis=-1)

    assert log_probs.shape == (batch, vocab_size)
    row_sums = jnp.sum(jnp.exp(log_probs), axis=1)
    assert bool(jnp.all(jnp.abs(row_sums - 1.0) < 1e-3)), "rows not normalized"
    assert bool(jnp.max(jnp.abs(log_probs - ref)) < 2e-2), "mismatch vs ref"

    print("KERNEL_OK")
</pallas_src>

<mosaic_0001>
module attributes {stable_mosaic.version = 11 : i64} {
  func.func @cbow_kernel(%arg0: i32, %arg1: i32, %arg2: i32, %arg3: memref<128x128xbf16, #tpu.memory_space<vmem>>, %arg4: memref<128x128xbf16, #tpu.memory_space<vmem>>, %arg5: memref<1x128xf32, #tpu.memory_space<vmem>>, %arg6: memref<128x1024xbf16, #tpu.memory_space<vmem>>, %arg7: memref<1x1024xf32, #tpu.memory_space<vmem>>, %arg8: memref<128x512xf32, #tpu.memory_space<vmem>>, %arg9: memref<128x128xbf16, #tpu.memory_space<vmem>>, %arg10: memref<128x1xf32, #tpu.memory_space<vmem>>, %arg11: memref<128x1xf32, #tpu.memory_space<vmem>>, %arg12: memref<128x1xf32, #tpu.memory_space<vmem>>) attributes {dimension_semantics = [#tpu.dimension_semantics<parallel>, #tpu.dimension_semantics<arbitrary>, #tpu.dimension_semantics<arbitrary>], iteration_bounds = array<i64: 2, 2, 2>, scalar_prefetch = 0 : i64, scratch_operands = 4 : i64, tpu.core_type = #tpu.core_type<tc>, window_params = [{transform_indices = @transform_0, window_bounds = array<i64: 128, 128>}, {pipeline_mode = #tpu.pipeline_mode<synchronous>, transform_indices = @transform_1, window_bounds = array<i64: 128, 128>}, {pipeline_mode = #tpu.pipeline_mode<synchronous>, transform_indices = @transform_2, window_bounds = array<i64: 1, 128>}, {pipeline_mode = #tpu.pipeline_mode<synchronous>, transform_indices = @transform_3, window_bounds = array<i64: 128, 1024>}, {pipeline_mode = #tpu.pipeline_mode<synchronous>, transform_indices = @transform_4, window_bounds = array<i64: 1, 1024>}, {transform_indices = @transform_5, window_bounds = array<i64: 128, 512>}]} {
    %c0_i32 = arith.constant 0 : i32
    %0 = arith.cmpi eq, %arg1, %c0_i32 : i32
    %c0_i32_0 = arith.constant 0 : i32
    %1 = arith.cmpi eq, %arg2, %c0_i32_0 : i32
    %2 = arith.andi %0, %1 : i1
    %3 = arith.extui %2 : i1 to i32
    %c0_i32_1 = arith.constant 0 : i32
    %4 = arith.cmpi ne, %3, %c0_i32_1 : i32
    scf.if %4 {
      %c0_11 = arith.constant 0 : index
      %c0_12 = arith.constant 0 : index
      %26 = vector.load %arg3[%c0_11, %c0_12] : memref<128x128xbf16, #tpu.memory_space<vmem>>, vector<128x128xbf16>
      %c0_13 = arith.constant 0 : index
      %c0_14 = arith.constant 0 : index
      %27 = vector.load %arg4[%c0_13, %c0_14] : memref<128x128xbf16, #tpu.memory_space<vmem>>, vector<128x128xbf16>
      %cst_15 = arith.constant dense<0.000000e+00> : vector<128x128xf32>
      %28 = tpu.matmul %26, %27, %cst_15 {dimension_numbers = #tpu.dot_dimension_numbers<[1], [0], [0], [1], [0, 0, 1, 1], [], []>} : vector<128x128xbf16>, vector<128x128xbf16>, vector<128x128xf32> -> vector<128x128xf32>
      %c0_16 = arith.constant 0 : index
      %c0_17 = arith.constant 0 : index
      %29 = vector.load %arg5[%c0_16, %c0_17] : memref<1x128xf32, #tpu.memory_space<vmem>>, vector<1x128xf32>
      %30 = vector.broadcast %29 : vector<1x128xf32> to vector<128x128xf32>
      %31 = arith.addf %28, %30 : vector<128x128xf32>
      %cst_18 = arith.constant 0.000000e+00 : f32
      %32 = vector.broadcast %cst_18 : f32 to vector<128x128xf32>
      %33 = arith.maximumf %31, %32 : vector<128x128xf32>
      %34 = arith.truncf %33 : vector<128x128xf32> to vector<128x128xbf16>
      %c0_19 = arith.constant 0 : index
      %c0_20 = arith.constant 0 : index
      %35 = vector.load %arg9[%c0_19, %c0_20] : memref<128x128xbf16, #tpu.memory_space<vmem>>, vector<128x128xbf16>
      tpu.vector_store %arg9[%c0_19, %c0_20], %34 {strides = array<i32>} : memref<128x128xbf16, #tpu.memory_space<vmem>>, vector<128x128xbf16>,
      %cst_21 = arith.constant 0xFF800000 : f32
      %36 = vector.broadcast %cst_21 : f32 to vector<128x1xf32>
      %c0_22 = arith.constant 0 : index
      %c0_23 = arith.constant 0 : index
      %37 = vector.load %arg10[%c0_22, %c0_23] : memref<128x1xf32, #tpu.memory_space<vmem>>, vector<128x1xf32>
      tpu.vector_store %arg10[%c0_22, %c0_23], %36 {strides = array<i32>} : memref<128x1xf32, #tpu.memory_space<vmem>>, vector<128x1xf32>,
      %cst_24 = arith.constant 0.000000e+00 : f32
      %38 = vector.broadcast %cst_24 : f32 to vector<128x1xf32>
      %c0_25 = arith.constant 0 : index
      %c0_26 = arith.constant 0 : index
      %39 = vector.load %arg11[%c0_25, %c0_26] : memref<128x1xf32, #tpu.memory_space<vmem>>, vector<128x1xf32>
      tpu.vector_store %arg11[%c0_25, %c0_26], %38 {strides = array<i32>} : memref<128x1xf32, #tpu.memory_space<vmem>>, vector<128x1xf32>,
    } else {
    }
    %c512_i32 = arith.constant 512 : i32
    %5 = arith.muli %arg2, %c512_i32 : i32
    %6 = tpu.assume_multiple %5, 128 : i32
    %c0 = arith.constant 0 : index
    %c0_2 = arith.constant 0 : index
    %7 = vector.load %arg9[%c0, %c0_2] : memref<128x128xbf16, #tpu.memory_space<vmem>>, vector<128x128xbf16>
    %c0_3 = arith.constant 0 : index
    %8 = arith.index_cast %6 : i32 to index
    %9 = vector.load %arg6[%c0_3, %8] : memref<128x1024xbf16, #tpu.memory_space<vmem>>, vector<128x512xbf16>
    %cst = arith.constant dense<0.000000e+00> : vector<128x512xf32>
    %10 = tpu.matmul %7, %9, %cst {dimension_numbers = #tpu.dot_dimension_numbers<[1], [0], [0], [1], [0, 0, 1, 1], [], []>} : vector<128x128xbf16>, vector<128x512xbf16>, vector<128x512xf32> -> vector<128x512xf32>
    %c0_4 = arith.constant 0 : index
    %11 = arith.index_cast %6 : i32 to index
    %12 = vector.load %arg7[%c0_4, %11] : memref<1x1024xf32, #tpu.memory_space<vmem>>, vector<1x512xf32>
    %13 = vector.broadcast %12 : vector<1x512xf32> to vector<128x512xf32>
    %14 = arith.addf %10, %13 : vector<128x512xf32>
    %c0_i32_5 = arith.constant 0 : i32
    %15 = arith.cmpi eq, %arg1, %c0_i32_5 : i32
    %16 = arith.extui %15 : i1 to i32
    %c0_i32_6 = arith.constant 0 : i32
    %17 = arith.cmpi ne, %16, %c0_i32_6 : i32
    scf.if %17 {
      %c0_11 = arith.constant 0 : index
      %c0_12 = arith.constant 0 : index
      %26 = vector.load %arg10[%c0_11, %c0_12] : memref<128x1xf32, #tpu.memory_space<vmem>>, vector<128x1xf32>
      %cst_13 = arith.constant dense<0xFF800000> : vector<128xf32>
      %27 = vector.multi_reduction <maximumf>, %14, %cst_13 [1] : vector<128x512xf32> to vector<128xf32>
      %28 = vector.shape_cast %27 : vector<128xf32> to vector<128x1xf32>
      %29 = arith.maximumf %26, %28 : vector<128x1xf32>
      %c0_14 = arith.constant 0 : index
      %c0_15 = arith.constant 0 : index
      %30 = vector.load %arg11[%c0_14, %c0_15] : memref<128x1xf32, #tpu.memory_space<vmem>>, vector<128x1xf32>
      %31 = arith.subf %26, %29 : vector<128x1xf32>
      %32 = math.exp %31 : vector<128x1xf32>
      %33 = arith.mulf %30, %32 : vector<128x1xf32>
      %34 = vector.broadcast %29 : vector<128x1xf32> to vector<128x512xf32>
      %35 = arith.subf %14, %34 : vector<128x512xf32>
      %36 = math.exp %35 : vector<128x512xf32>
      %cst_16 = arith.constant dense<0.000000e+00> : vector<128xf32>
      %37 = vector.multi_reduction <add>, %36, %cst_16 [1] : vector<128x512xf32> to vector<128xf32>
      %38 = vector.shape_cast %37 : vector<128xf32> to vector<128x1xf32>
      %39 = arith.addf %33, %38 : vector<128x1xf32>
      %c0_17 = arith.constant 0 : index
      %c0_18 = arith.constant 0 : index
      %40 = vector.load %arg11[%c0_17, %c0_18] : memref<128x1xf32, #tpu.memory_space<vmem>>, vector<128x1xf32>
      tpu.vector_store %arg11[%c0_17, %c0_18], %39 {strides = array<i32>} : memref<128x1xf32, #tpu.memory_space<vmem>>, vector<128x1xf32>,
      %c0_19 = arith.constant 0 : index
      %c0_20 = arith.constant 0 : index
      %41 = vector.load %arg10[%c0_19, %c0_20] : memref<128x1xf32, #tpu.memory_space<vmem>>, vector<128x1xf32>
      tpu.vector_store %arg10[%c0_19, %c0_20], %29 {strides = array<i32>} : memref<128x1xf32, #tpu.memory_space<vmem>>, vector<128x1xf32>,
    } else {
    }
    %c0_i32_7 = arith.constant 0 : i32
    %18 = arith.cmpi eq, %arg1, %c0_i32_7 : i32
    %c1_i32 = arith.constant 1 : i32
    %19 = arith.cmpi eq, %arg2, %c1_i32 : i32
    %20 = arith.andi %18, %19 : i1
    %21 = arith.extui %20 : i1 to i32
    %c0_i32_8 = arith.constant 0 : i32
    %22 = arith.cmpi ne, %21, %c0_i32_8 : i32
    scf.if %22 {
      %c0_11 = arith.constant 0 : index
      %c0_12 = arith.constant 0 : index
      %26 = vector.load %arg10[%c0_11, %c0_12] : memref<128x1xf32, #tpu.memory_space<vmem>>, vector<128x1xf32>
      %c0_13 = arith.constant 0 : index
      %c0_14 = arith.constant 0 : index
      %27 = vector.load %arg11[%c0_13, %c0_14] : memref<128x1xf32, #tpu.memory_space<vmem>>, vector<128x1xf32>
      %28 = math.log %27 : vector<128x1xf32>
      %29 = arith.addf %26, %28 : vector<128x1xf32>
      %c0_15 = arith.constant 0 : index
      %c0_16 = arith.constant 0 : index
      %30 = vector.load %arg12[%c0_15, %c0_16] : memref<128x1xf32, #tpu.memory_space<vmem>>, vector<128x1xf32>
      tpu.vector_store %arg12[%c0_15, %c0_16], %29 {strides = array<i32>} : memref<128x1xf32, #tpu.memory_space<vmem>>, vector<128x1xf32>,
    } else {
    }
    %c1_i32_9 = arith.constant 1 : i32
    %23 = arith.cmpi eq, %arg1, %c1_i32_9 : i32
    %24 = arith.extui %23 : i1 to i32
    %c0_i32_10 = arith.constant 0 : i32
    %25 = arith.cmpi ne, %24, %c0_i32_10 : i32
    scf.if %25 {
      %c0_11 = arith.constant 0 : index
      %c0_12 = arith.constant 0 : index
      %26 = vector.load %arg12[%c0_11, %c0_12] : memref<128x1xf32, #tpu.memory_space<vmem>>, vector<128x1xf32>
      %27 = vector.broadcast %26 : vector<128x1xf32> to vector<128x512xf32>
      %28 = arith.subf %14, %27 : vector<128x512xf32>
      %c0_13 = arith.constant 0 : index
      %c0_14 = arith.constant 0 : index
      %29 = vector.load %arg8[%c0_13, %c0_14] : memref<128x512xf32, #tpu.memory_space<vmem>>, vector<128x512xf32>
      tpu.vector_store %arg8[%c0_13, %c0_14], %28 {strides = array<i32>} : memref<128x512xf32, #tpu.memory_space<vmem>>, vector<128x512xf32>,
    } else {
    }
    return
  }
  func.func @transform_0(%arg0: i32, %arg1: i32, %arg2: i32) -> (i32, i32) {
    %c0_i32 = arith.constant 0 : i32
    %c0_i32_0 = arith.constant 0 : i32
    return %arg0, %c0_i32 : i32, i32
  }
  func.func @transform_1(%arg0: i32, %arg1: i32, %arg2: i32) -> (i32, i32) {
    %c0_i32 = arith.constant 0 : i32
    %c0_i32_0 = arith.constant 0 : i32
    %c0_i32_1 = arith.constant 0 : i32
    return %c0_i32, %c0_i32_0 : i32, i32
  }
  func.func @transform_2(%arg0: i32, %arg1: i32, %arg2: i32) -> (i32, i32) {
    %c0_i32 = arith.constant 0 : i32
    %c0_i32_0 = arith.constant 0 : i32
    %c0_i32_1 = arith.constant 0 : i32
    return %c0_i32, %c0_i32_0 : i32, i32
  }
  func.func @transform_3(%arg0: i32, %arg1: i32, %arg2: i32) -> (i32, i32) {
    %c0_i32 = arith.constant 0 : i32
    %c0_i32_0 = arith.constant 0 : i32
    %c0_i32_1 = arith.constant 0 : i32
    return %c0_i32, %c0_i32_0 : i32, i32
  }
  func.func @transform_4(%arg0: i32, %arg1: i32, %arg2: i32) -> (i32, i32) {
    %c0_i32 = arith.constant 0 : i32
    %c0_i32_0 = arith.constant 0 : i32
    %c0_i32_1 = arith.constant 0 : i32
    return %c0_i32, %c0_i32_0 : i32, i32
  }
  func.func @transform_5(%arg0: i32, %arg1: i32, %arg2: i32) -> (i32, i32) {
    %0 = arith.muli %arg1, %arg2 : i32
    %c0_i32 = arith.constant 0 : i32
    return %arg0, %0 : i32, i32
  }
}

</mosaic_0001>

<bundles_post_ra>
// kernel: cbow_forward.1
= control target key start
LH: loop header
LB: loop body
LE: loop exit
PB: predicated region body
PF: predicated region fallthrough
CT: control target
= control target key end

     0   :  { %s2906_s18 = smov 0   ;;  %s2908_s19 = smov 0   ;;  %s4093_s0 = inlined_call_operand.vmem [shape: bf16[256,128], index: 0, kind: input, shape index: {}]   ;;  %s4094_s1 = inlined_call_operand.vmem [shape: bf16[128,128], index: 1, kind: input, shape index: {}]   ;;  %s4095_s2 = inlined_call_operand.vmem [shape: f32[1,128], index: 2, kind: input, shape index: {}]   ;;  %s4096_s3 = inlined_call_operand.vmem [shape: bf16[128,1024], index: 3, kind: input, shape index: {}]   ;;  %s4097_s4 = inlined_call_operand.vmem [shape: f32[1,1024], index: 4, kind: input, shape index: {}]   ;;  %s4098_s5 = inlined_call_operand.vmem [shape: f32[256,1024], index: 5, kind: output, shape index: {}]  }
   0x1   :  { %s2910_s20 = smov 0   ;;  %s2912_s21 = smov 0  }
   0x2   :  { %s2914_s22 = smov 0   ;;  %s2916_s23 = smov 0  }
   0x3   :  { %s2918_s24 = smov 0   ;;  %s2920_s25 = smov 0  }
   0x4   :  { %s2922_s26 = smov 0  }
   0x5 LB: > { %s27_s27 = sadd.s32 1, %s2857_s23  ;;  %s30_s28 = sadd.s32 1, %s2861_s24  ;;  %s2869_s26 = sphi %s2922_s26, %s15_s26   ;;  %s2865_s25 = sphi %s2920_s25, %s4382_s25   ;;  %s2861_s24 = sphi %s2918_s24, %s4381_s24   ;;  %s2857_s23 = sphi %s2916_s23, %s4380_s23   ;;  %s2853_s22 = sphi %s2914_s22, %s4379_s22   ;;  %s2849_s21 = sphi %s2912_s21, %s4378_s21   ;;  %s2845_s20 = sphi %s2910_s20, %s4377_s20   ;;  %s2841_s19 = sphi %s2908_s19, %s4376_s19   ;;  %s2837_s18 = sphi %s2906_s18, %s4375_s18  }
   0x6   : > { %p28_p0 = scmp.ge.s32.totalorder %s27_s27, 2  ;;  %s2282_s29 = sadd.s32 4294967295, %s2869_s26  }
   0x7   : > { %s34_s30 = sadd.s32 1, %s2865_s25  ;;  %s148_s6 = smul.u32 %s2857_s23, %s2861_s24 }
   0x8   : > { %s4384_s27 = smov (%p28_p0, %s27_s27), 0  ;;  %s4386_s28 = smov (!%p28_p0, %s30_s28), %s2861_s24 }
   0x9   : > { %p165_p1 = scmp.ne.s32.totalorder %s2841_s19, %s2837_s18  ;;  %p32_p2 = scmp.ge.s32.totalorder %s4386_s28, 2 }
   0xa   : > { %p166_p3 = scmp.eq.s32.totalorder %s2282_s29, 7  ;;  %p2286_p4 = scmp.ge.s32.totalorder %s2869_s26, 1 }
   0xb   : > { %p211_p5 = scmp.lt.s32.totalorder %s2869_s26, 9  ;;  %s4388_s28 = smov (%p32_p2, %s4386_s28), 0 }
   0xc   : > { %s4390_s30 = smov (!%p32_p2, %s34_s30), %s2865_s25  ;;  %s149_s7 = smul.u32 %s4388_s28, %s4384_s27 }
   0xd   : > { %p2969_p6 = por %p166_p3, %p165_p1  ;;  %p36_p7 = scmp.ge.s32.totalorder %s4390_s30, 2 }
   0xe   : > { %p212_p8 = pnand %p2286_p4, %p211_p5  ;;  %s151_s9 = ssub.s32 %s148_s6, %s149_s7 }
   0xf   : > { %s4392_s30 = smov (%p36_p7, %s4390_s30), 0  ;;  %s155_s12 = sadd.s32 1, %s2841_s19 }
  0x10   : > { %s150_s10 = ssub.s32 %s2865_s25, %s4392_s30  ;;  %215 = sbr.rel (%p212_p8) target bundleno = 1323 (0x52b), region = 40 }
  0x11   : > { %s152_s11 = sor.u32 %s151_s9, %s150_s10 }
  0x12   : > { %p153_p9 = scmp.eq.s32.totalorder %s152_s11, 0 }
  0x14   : > { %s2979_s13 = scalar_select %p153_p9, %s2841_s19, %s155_s12  }
  0x15   : > { %s235_s14 = sand.u32 1, %s2837_s18   ;;  %s2288_s15 = sshll.u32 %s2853_s22, 4 }
  0x16   : > { %s2287_s16 = sshll.u32 %s235_s14, 9  ;;  %p239_p10 = scmp.lt.s32.totalorder %s2288_s15, 31 }
  0x17   : > { %p248_p11 = scmp.eq.s32.totalorder %s2849_s21, 0  ;;  %p249_p12 = scmp.eq.s32.totalorder %s2845_s20, 0 }
  0x18   : > { %s4394_s15 = smov (!%p239_p10, %s2288_s15), 31  ;;  %s2992_s9 = scalar_lea.vmem [#allocation6], %s2287_s16 }
  0x19   : > { %s2289_s17 = sshll.u32 %s4394_s15, 2  ;;  %p250_p13 = pnand %p249_p12, %p248_p11 }
  0x1a   : > { %s2988_s7 = scalar_lea.vmem %s4093_s0, %s2289_s17 }
  0x1b   : > { %253 = sbr.rel (%p250_p13) target bundleno = 279 (0x117), region = 44 }
  0x20   : > { %v2579_v0 = vld [vmem:[%s4094_s1 + $0x38] sm:$0xff]   ;;  %v2580_v1 = vld [vmem:[%s4094_s1 + $0x30] sm:$0xff]   ;;  %v2581_v2 = vld [vmem:[%s4094_s1 + $0x28] sm:$0xff]   ;;  %vm582_vm0 = vcmask 7168   ;;  %v2871_v16 = vmov -inf   ;;  %v2872_v17 = vmov 0.0  }
  0x21   : > { %2454 = vmatprep.subr.bf16.mxu0 %v2579_v0  ;;  %2486 = vmatprep.subr.bf16.mxu1 %v2579_v0  ;;  %v2582_v3 = vld [vmem:[%s4094_s1 + $0x20] sm:$0xff]   ;;  %v2583_v6 = vld [vmem:[%s4094_s1 + $0x18] sm:$0xff]   ;;  %v2584_v7 = vld [vmem:[%s4094_s1 + $0x10] sm:$0xff]   ;;  %583 = vst.msk [vmem:[#allocation3] sm:$0xff] %vm582_vm0, %v2871_v16 }
  0x22   : > { %2455 = vmatpush3.bf16.msra.mxu0 %v2579_v0  ;;  %2494 = vmatpush3.bf16.msra.mxu1 %v2579_v0  ;;  %v2587_v4 = vld [vmem:[%s2988_s7] sm:$0xff]   ;;  %v2585_v8 = vld [vmem:[%s4094_s1 + $0x8] sm:$0xff]   ;;  %v2591_v12 = vld [vmem:[%s2988_s7 + $0x10] sm:$0xff]   ;;  %584 = vst.msk [vmem:[#allocation3 + $0x8] sm:$0xff] %vm582_vm0, %v2871_v16 }
  0x23   : > { %2456 = vmatprep.subr.bf16.mxu0 %v2580_v1  ;;  %2487 = vmatprep.subr.bf16.mxu1 %v2580_v1  ;;  %v2588_v5 = vld [vmem:[%s2988_s7 + $0x20] sm:$0xff]   ;;  %v2589_v10 = vld [vmem:[%s2988_s7 + $0x8] sm:$0xff]   ;;  %v2592_v13 = vld [vmem:[%s2988_s7 + $0x30] sm:$0xff]   ;;  %585 = vst.msk [vmem:[#allocation3 + $0x10] sm:$0xff] %vm582_vm0, %v2871_v16 }
  0x24   : > { %2470 = vmatprep.mubr.bf16.mxu0 %v2587_v4  ;;  %2478 = vmatprep.mubr.bf16.mxu1 %v2588_v5  ;;  %v2586_v9 = vld [vmem:[%s4094_s1] sm:$0xff]   ;;  %v2590_v11 = vld [vmem:[%s2988_s7 + $0x28] sm:$0xff]   ;;  %v2593_v14 = vld [vmem:[%s2988_s7 + $0x18] sm:$0xff]   ;;  %586 = vst.msk [vmem:[#allocation3 + $0x18] sm:$0xff] %vm582_vm0, %v2871_v16 }
  0x25   : > { %v2594_v15 = vld [vmem:[%s2988_s7 + $0x38] sm:$0xff]   ;;  %587 = vst.msk [vmem:[#allocation3 + $0x20] sm:$0xff] %vm582_vm0, %v2871_v16  ;;  %588 = vst.msk [vmem:[#allocation3 + $0x28] sm:$0xff] %vm582_vm0, %v2871_v16  ;;  %v2290_v18 = vld [vmem:[%s4095_s2] ss:$0 sm:$0xff] }
  0x26   : > { %2457 = vmatpush3.bf16.msra.mxu0 %v2580_v1  ;;  %2495 = vmatpush3.bf16.msra.mxu1 %v2580_v1  ;;  %589 = vst.msk [vmem:[#allocation3 + $0x30] sm:$0xff] %vm582_vm0, %v2871_v16  ;;  %590 = vst.msk [vmem:[#allocation3 + $0x38] sm:$0xff] %vm582_vm0, %v2871_v16 }
  0x27   : > { %2458 = vmatprep.subr.bf16.mxu0 %v2581_v2  ;;  %2488 = vmatprep.subr.bf16.mxu1 %v2581_v2  ;;  %591 = vst.msk [vmem:[#allocation3 + $0x40] sm:$0xff] %vm582_vm0, %v2871_v16  ;;  %592 = vst.msk [vmem:[#allocation3 + $0x48] sm:$0xff] %vm582_vm0, %v2871_v16 }
  0x28   : > { %593 = vst.msk [vmem:[#allocation3 + $0x50] sm:$0xff] %vm582_vm0, %v2871_v16  ;;  %594 = vst.msk [vmem:[#allocation3 + $0x58] sm:$0xff] %vm582_vm0, %v2871_v16 }
  0x29   : > { %595 = vst.msk [vmem:[#allocation3 + $0x60] sm:$0xff] %vm582_vm0, %v2871_v16  ;;  %596 = vst.msk [vmem:[#allocation3 + $0x68] sm:$0xff] %vm582_vm0, %v2871_v16 }
  0x2a   : > { %2459 = vmatpush3.bf16.msra.mxu0 %v2581_v2  ;;  %2496 = vmatpush3.bf16.msra.mxu1 %v2581_v2  ;;  %597 = vst.msk [vmem:[#allocation3 + $0x70] sm:$0xff] %vm582_vm0, %v2871_v16  ;;  %598 = vst.msk [vmem:[#allocation3 + $0x78] sm:$0xff] %vm582_vm0, %v2871_v16 }
  0x2b   : > { %2460 = vmatprep.subr.bf16.mxu0 %v2582_v3  ;;  %2489 = vmatprep.subr.bf16.mxu1 %v2582_v3  ;;  %599 = vst.msk [vmem:[#allocation4] sm:$0xff] %vm582_vm0, %v2872_v17  ;;  %600 = vst.msk [vmem:[#allocation4 + $0x8] sm:$0xff] %vm582_vm0, %v2872_v17 }
  0x2c   : > { %601 = vst.msk [vmem:[#allocation4 + $0x10] sm:$0xff] %vm582_vm0, %v2872_v17  ;;  %602 = vst.msk [vmem:[#allocation4 + $0x18] sm:$0xff] %vm582_vm0, %v2872_v17 }
  0x2d   : > { %603 = vst.msk [vmem:[#allocation4 + $0x20] sm:$0xff] %vm582_vm0, %v2872_v17  ;;  %604 = vst.msk [vmem:[#allocation4 + $0x28] sm:$0xff] %vm582_vm0, %v2872_v17 }
  0x2e   : > { %2461 = vmatpush3.bf16.msra.mxu0 %v2582_v3  ;;  %2497 = vmatpush3.bf16.msra.mxu1 %v2582_v3  ;;  %605 = vst.msk [vmem:[#allocation4 + $0x30] sm:$0xff] %vm582_vm0, %v2872_v17  ;;  %606 = vst.msk [vmem:[#allocation4 + $0x38] sm:$0xff] %vm582_vm0, %v2872_v17 }
  0x2f   : > { %2462 = vmatprep.subr.bf16.mxu0 %v2583_v6  ;;  %2490 = vmatprep.subr.bf16.mxu1 %v2583_v6  ;;  %607 = vst.msk [vmem:[#allocation4 + $0x40] sm:$0xff] %vm582_vm0, %v2872_v17  ;;  %608 = vst.msk [vmem:[#allocation4 + $0x48] sm:$0xff] %vm582_vm0, %v2872_v17 }
  0x30   : > { %609 = vst.msk [vmem:[#allocation4 + $0x50] sm:$0xff] %vm582_vm0, %v2872_v17  ;;  %610 = vst.msk [vmem:[#allocation4 + $0x58] sm:$0xff] %vm582_vm0, %v2872_v17 }
  0x31   : > { %611 = vst.msk [vmem:[#allocation4 + $0x60] sm:$0xff] %vm582_vm0, %v2872_v17  ;;  %612 = vst.msk [vmem:[#allocation4 + $0x68] sm:$0xff] %vm582_vm0, %v2872_v17 }
  0x32   : > { %2463 = vmatpush3.bf16.msra.mxu0 %v2583_v6  ;;  %2498 = vmatpush3.bf16.msra.mxu1 %v2583_v6  ;;  %613 = vst.msk [vmem:[#allocation4 + $0x70] sm:$0xff] %vm582_vm0, %v2872_v17  ;;  %614 = vst.msk [vmem:[#allocation4 + $0x78] sm:$0xff] %vm582_vm0, %v2872_v17 }
  0x33   : > { %2464 = vmatprep.subr.bf16.mxu0 %v2584_v7  ;;  %2491 = vmatprep.subr.bf16.mxu1 %v2584_v7 }
  0x36   : > { %2465 = vmatpush3.bf16.msra.mxu0 %v2584_v7  ;;  %2499 = vmatpush3.bf16.msra.mxu1 %v2584_v7 }
  0x37   : > { %2466 = vmatprep.subr.bf16.mxu0 %v2585_v8  ;;  %2492 = vmatprep.subr.bf16.mxu1 %v2585_v8 }
  0x3a   : > { %2467 = vmatpush3.bf16.msra.mxu0 %v2585_v8  ;;  %2500 = vmatpush3.bf16.msra.mxu1 %v2585_v8 }
  0x3b   : > { %2468 = vmatprep.subr.bf16.mxu0 %v2586_v9  ;;  %2493 = vmatprep.subr.bf16.mxu1 %v2586_v9 }
  0x3e   : > { %2469 = vmatpush3.bf16.msra.mxu0 %v2586_v9  ;;  %2501 = vmatpush3.bf16.msra.mxu1 %v2586_v9 }
  0x41   : > { %2471 = vmatmul.mubr.bf16.vlgmr.msra.gmra.mxu0 %v2589_v10  ;;  %2479 = vmatmul.mubr.bf16.vlgmr.msra.gmra.mxu1 %v2590_v11 }
  0x42   : > { %2474 = vmatprep.mubr.bf16.mxu0 %v2591_v12  ;;  %2482 = vmatprep.mubr.bf16.mxu1 %v2592_v13 }
  0x49   : > { %2475 = vmatmul.mubr.bf16.gmra.mxu0 %v2593_v14  ;;  %2483 = vmatmul.mubr.bf16.gmra.mxu1 %v2594_v15 }
 0x101   : > { %v2472_v19 = vpop.f32.mrf.mxu0  ;;  %v2480_v20 = vpop.f32.mrf.mxu1 }
 0x102   : > { %v432_v21 = vadd.f32 %v2472_v19, %v2290_v18  ;;  %v464_v22 = vadd.f32 %v2480_v20, %v2290_v18 }
 0x103   : > { %v423_v23 = vpop.f32.mrf.mxu0  ;;  %v455_v24 = vpop.f32.mrf.mxu1 }
 0x104   : > { %v424_v25 = vadd.f32 %v2290_v18, %v423_v23  ;;  %v456_v26 = vadd.f32 %v2290_v18, %v455_v24  ;;  %v488_v31 = vmax.f32 %v432_v21, 0.0  ;;  %v496_v32 = vmax.f32 %v464_v22, 0.0 }
 0x105   : > { %v2473_v27 = vpop.f32.mrf.mxu0  ;;  %v2481_v28 = vpop.f32.mrf.mxu1 }
 0x106   : > { %v435_v29 = vadd.f32 %v2473_v27, %v2290_v18  ;;  %v467_v30 = vadd.f32 %v2481_v28, %v2290_v18  ;;  %v486_v39 = vmax.f32 %v424_v25, 0.0  ;;  %v494_v40 = vmax.f32 %v456_v26, 0.0 }
 0x107   : > { %v426_v33 = vpop.f32.mrf.mxu0  ;;  %v458_v34 = vpop.f32.mrf.mxu1 }
 0x108   : > { %v489_v35 = vmax.f32 %v435_v29, 0.0  ;;  %v497_v36 = vmax.f32 %v467_v30, 0.0  ;;  %v427_v37 = vadd.f32 %v2290_v18, %v426_v33  ;;  %v459_v38 = vadd.f32 %v2290_v18, %v458_v34 }
 0x109   : > { %v2476_v41 = vpop.f32.mrf.mxu0  ;;  %v2484_v42 = vpop.f32.mrf.mxu1 }
 0x10a   : > { %v2399_v43 = vpack.c.bf16 %v489_v35, %v488_v31  ;;  %v2419_v44 = vpack.c.bf16 %v497_v36, %v496_v32  ;;  %v487_v45 = vmax.f32 %v427_v37, 0.0  ;;  %v495_v46 = vmax.f32 %v459_v38, 0.0 }
 0x10b   : > { %v448_v47 = vadd.f32 %v2476_v41, %v2290_v18  ;;  %v480_v48 = vadd.f32 %v2484_v42, %v2290_v18  ;;  %v439_v49 = vpop.f32.mrf.mxu0  ;;  %v471_v50 = vpop.f32.mrf.mxu1 }
 0x10c   : > { %2431 = vst [vmem:[#allocation2 + $0x8] sm:$0xff] %v2399_v43   ;;  %2435 = vst [vmem:[#allocation2 + $0x28] sm:$0xff] %v2419_v44   ;;  %v2394_v51 = vpack.c.bf16 %v487_v45, %v486_v39  ;;  %v2414_v52 = vpack.c.bf16 %v495_v46, %v494_v40  ;;  %v440_v53 = vadd.f32 %v2290_v18, %v439_v49 }
 0x10d   : > { %v472_v54 = vadd.f32 %v2290_v18, %v471_v50  ;;  %v2477_v55 = vpop.f32.mrf.mxu0  ;;  %v2485_v56 = vpop.f32.mrf.mxu1  ;;  %v492_v59 = vmax.f32 %v448_v47, 0.0  ;;  %v500_v60 = vmax.f32 %v480_v48, 0.0 }
 0x10e   : > { %2395 = vst [vmem:[#allocation2] sm:$0xff] %v2394_v51   ;;  %2434 = vst [vmem:[#allocation2 + $0x20] sm:$0xff] %v2414_v52   ;;  %v451_v57 = vadd.f32 %v2477_v55, %v2290_v18  ;;  %v483_v58 = vadd.f32 %v2485_v56, %v2290_v18  ;;  %v490_v3 = vmax.f32 %v440_v53, 0.0 }
 0x10f   : > { %v442_v61 = vpop.f32.mrf.mxu0  ;;  %v474_v62 = vpop.f32.mrf.mxu1  ;;  %v498_v4 = vmax.f32 %v472_v54, 0.0 }
 0x110   : > { %v493_v63 = vmax.f32 %v451_v57, 0.0  ;;  %v501_v0 = vmax.f32 %v483_v58, 0.0  ;;  %v443_v1 = vadd.f32 %v2290_v18, %v442_v61  ;;  %v475_v2 = vadd.f32 %v2290_v18, %v474_v62 }
 0x112   : > { %v2409_v5 = vpack.c.bf16 %v493_v63, %v492_v59  ;;  %v2429_v6 = vpack.c.bf16 %v501_v0, %v500_v60  ;;  %v491_v7 = vmax.f32 %v443_v1, 0.0  ;;  %v499_v8 = vmax.f32 %v475_v2, 0.0 }
 0x114   : > { %2433 = vst [vmem:[#allocation2 + $0x18] sm:$0xff] %v2409_v5   ;;  %2437 = vst [vmem:[#allocation2 + $0x38] sm:$0xff] %v2429_v6   ;;  %v2404_v9 = vpack.c.bf16 %v491_v7, %v490_v3  ;;  %v2424_v10 = vpack.c.bf16 %v499_v8, %v498_v4 }
 0x116   : > { %2432 = vst [vmem:[#allocation2 + $0x10] sm:$0xff] %v2404_v9   ;;  %2436 = vst [vmem:[#allocation2 + $0x30] sm:$0xff] %v2424_v10  }
 0x117 PF: > { %s2323_s17 = sshll.u32 %s2845_s20, 9  ;;  %v2873_v11 = vmov 0   ;;  %p2365_p0 = scmp.ne.s32.totalorder %s2849_s21, 0 }
 0x118   : > { %s3062_s29 = sshra.s32 %s2323_s17, 7  ;;  %931 = vmatprep.mubr.bf16.mxu0 %v2873_v11  ;;  %1044 = vmatprep.mubr.bf16.mxu1 %v2873_v11 }
 0x119   : > { %s2324_s6 = sshll.u32 %s3062_s29, 2  ;;  %s668_s15 = scalar_lea.vmem %s4097_s4, %s3062_s29 }
 0x11a   : > { %s3070_s18 = scalar_lea.vmem %s4096_s3, %s2324_s6 }
 0x11b   : > { %v664_v12 = vld [vmem:[%s3070_s18 + $0x1c0] sm:$0xff]  ;;  %v665_v14 = vld [vmem:[%s3070_s18 + $0x1c8] sm:$0xff] }
 0x11c   : > { %v666_v13 = vld [vmem:[%s3070_s18 + $0x1e0] sm:$0xff]  ;;  %v667_v16 = vld [vmem:[%s3070_s18 + $0x1e8] sm:$0xff] }
 0x11d   : > { %v2362_v15 = vcombine.high %v664_v12, %v666_v13  ;;  %v2361_v17 = vcombine.low %v664_v12, %v666_v13  ;;  %v660_v18 = vld [vmem:[%s3070_s18 + $0x180] sm:$0xff]  ;;  %v2364_v20 = vcombine.high %v665_v14, %v667_v16  ;;  %v2363_v21 = vcombine.low %v665_v14, %v667_v16  ;;  %v661_v23 = vld [vmem:[%s3070_s18 + $0x188] sm:$0xff]  ;;  %v2598_v16 = vld [vmem:[#allocation2 + $0x18] sm:$0xff]  }
 0x11e   : > { %v662_v19 = vld [vmem:[%s3070_s18 + $0x1a0] sm:$0xff]  ;;  %v663_v24 = vld [vmem:[%s3070_s18 + $0x1a8] sm:$0xff] }
 0x11f   : > { %v2358_v22 = vcombine.high %v660_v18, %v662_v19  ;;  %v656_v25 = vld [vmem:[%s3070_s18 + $0x140] sm:$0xff]  ;;  %899 = vmatprep.subr.bf16.mxu0 %v2362_v15  ;;  %v2360_v26 = vcombine.high %v661_v23, %v663_v24  ;;  %v657_v28 = vld [vmem:[%s3070_s18 + $0x148] sm:$0xff]  ;;  %1012 = vmatprep.subr.bf16.mxu1 %v2364_v20  ;;  %v2357_v30 = vcombine.low %v660_v18, %v662_v19  ;;  %v2597_v15 = vld [vmem:[#allocation2 + $0x10] sm:$0xff]  }
 0x120   : > { %v658_v27 = vld [vmem:[%s3070_s18 + $0x160] sm:$0xff]  ;;  %v659_v29 = vld [vmem:[%s3070_s18 + $0x168] sm:$0xff]  ;;  %900 = vmatpush1.bf16.msra.mxu0 %v2361_v17  ;;  %1013 = vmatpush1.bf16.msra.mxu1 %v2363_v21  ;;  %v2359_v31 = vcombine.low %v661_v23, %v663_v24  ;;  %v2601_v19 = vld [vmem:[#allocation2 + $0x30] sm:$0xff]   ;;  %v671_v21 = vlaneseq }
 0x121   : > { %901 = vmatprep.subr.bf16.mxu0 %v2358_v22  ;;  %v2354_v32 = vcombine.high %v656_v25, %v658_v27  ;;  %1014 = vmatprep.subr.bf16.mxu1 %v2360_v26  ;;  %v2356_v33 = vcombine.high %v657_v28, %v659_v29  ;;  %v652_v34 = vld [vmem:[%s3070_s18 + $0x100] sm:$0xff]  ;;  %v653_v36 = vld [vmem:[%s3070_s18 + $0x108] sm:$0xff]  ;;  %v2353_v38 = vcombine.low %v656_v25, %v658_v27  ;;  %v2602_v20 = vld [vmem:[#allocation2 + $0x38] sm:$0xff]  }
 0x122   : > { %v654_v35 = vld [vmem:[%s3070_s18 + $0x120] sm:$0xff]  ;;  %v655_v37 = vld [vmem:[%s3070_s18 + $0x128] sm:$0xff]  ;;  %v2355_v39 = vcombine.low %v657_v28, %v659_v29  ;;  %v672_v22 = vshrl.u32 %v671_v21, 7 }
 0x123   : > { %v2350_v40 = vcombine.high %v652_v34, %v654_v35  ;;  %v2352_v41 = vcombine.high %v653_v36, %v655_v37  ;;  %v648_v42 = vld [vmem:[%s3070_s18 + $0xc0] sm:$0xff]  ;;  %v649_v44 = vld [vmem:[%s3070_s18 + $0xc8] sm:$0xff]  ;;  %v2349_v46 = vcombine.low %v652_v34, %v654_v35  ;;  %v2351_v47 = vcombine.low %v653_v36, %v655_v37 }
 0x124   : > { %902 = vmatpush1.bf16.msra.mxu0 %v2357_v30  ;;  %1015 = vmatpush1.bf16.msra.mxu1 %v2359_v31  ;;  %v650_v43 = vld [vmem:[%s3070_s18 + $0xe0] sm:$0xff]  ;;  %v651_v45 = vld [vmem:[%s3070_s18 + $0xe8] sm:$0xff]  ;;  %v673_v23 = vsub.s32 0, %v672_v22  ;;  %v681_v25 = vsub.s32 2, %v672_v22  ;;  %v677_v26 = vsub.s32 1, %v672_v22  ;;  %v685_v27 = vsub.s32 3, %v672_v22 }
 0x125   : > { %903 = vmatprep.subr.bf16.mxu0 %v2354_v32  ;;  %1016 = vmatprep.subr.bf16.mxu1 %v2356_v33  ;;  %v2346_v48 = vcombine.high %v648_v42, %v650_v43  ;;  %v644_v49 = vld [vmem:[%s3070_s18 + $0x80] sm:$0xff]  ;;  %v2348_v50 = vcombine.high %v649_v44, %v651_v45  ;;  %v645_v52 = vld [vmem:[%s3070_s18 + $0x88] sm:$0xff]  ;;  %v2345_v54 = vcombine.low %v648_v42, %v650_v43 }
 0x126   : > { %v646_v51 = vld [vmem:[%s3070_s18 + $0xa0] sm:$0xff]  ;;  %v647_v53 = vld [vmem:[%s3070_s18 + $0xa8] sm:$0xff]  ;;  %v2347_v55 = vcombine.low %v649_v44, %v651_v45 }
 0x127   : > { %v2342_v56 = vcombine.high %v644_v49, %v646_v51  ;;  %v2344_v57 = vcombine.high %v645_v52, %v647_v53  ;;  %v640_v58 = vld [vmem:[%s3070_s18 + $0x40] sm:$0xff]  ;;  %v641_v60 = vld [vmem:[%s3070_s18 + $0x48] sm:$0xff]  ;;  %v2341_v62 = vcombine.low %v644_v49, %v646_v51  ;;  %v2343_v63 = vcombine.low %v645_v52, %v647_v53 }
 0x128   : > { %904 = vmatpush1.bf16.msra.mxu0 %v2353_v38  ;;  %1017 = vmatpush1.bf16.msra.mxu1 %v2355_v39  ;;  %v642_v59 = vld [vmem:[%s3070_s18 + $0x60] sm:$0xff]  ;;  %v643_v61 = vld [vmem:[%s3070_s18 + $0x68] sm:$0xff] }
 0x129   : > { %905 = vmatprep.subr.bf16.mxu0 %v2350_v40  ;;  %1018 = vmatprep.subr.bf16.mxu1 %v2352_v41  ;;  %v2338_v0 = vcombine.high %v640_v58, %v642_v59  ;;  %v2340_v1 = vcombine.high %v641_v60, %v643_v61  ;;  %v636_v2 = vld [vmem:[%s3070_s18] sm:$0xff]  ;;  %v637_v4 = vld [vmem:[%s3070_s18 + $0x8] sm:$0xff]  ;;  %v2337_v6 = vcombine.low %v640_v58, %v642_v59 }
 0x12a   : > { %v638_v3 = vld [vmem:[%s3070_s18 + $0x20] sm:$0xff]  ;;  %v639_v5 = vld [vmem:[%s3070_s18 + $0x28] sm:$0xff]  ;;  %v2339_v7 = vcombine.low %v641_v60, %v643_v61 }
 0x12b   : > { %v2334_v8 = vcombine.high %v636_v2, %v638_v3  ;;  %v2336_v9 = vcombine.high %v637_v4, %v639_v5  ;;  %v2333_v10 = vcombine.low %v636_v2, %v638_v3  ;;  %v2335_v12 = vcombine.low %v637_v4, %v639_v5  ;;  %v2595_v13 = vld [vmem:[#allocation2] sm:$0xff]   ;;  %v2596_v14 = vld [vmem:[#allocation2 + $0x8] sm:$0xff]  }
 0x12c   : > { %906 = vmatpush1.bf16.msra.mxu0 %v2349_v46  ;;  %1019 = vmatpush1.bf16.msra.mxu1 %v2351_v47  ;;  %v2599_v17 = vld [vmem:[#allocation2 + $0x20] sm:$0xff]   ;;  %v2600_v18 = vld [vmem:[#allocation2 + $0x28] sm:$0xff]  }
 0x12d   : > { %907 = vmatprep.subr.bf16.mxu0 %v2346_v48  ;;  %1020 = vmatprep.subr.bf16.mxu1 %v2348_v50  ;;  %v669_v24 = vld [vmem:[%s668_s15] sm:$0xf] }
 0x12e   : > { %v3122_v28 = vrot.slane %v669_v24, %v673_v23  ;;  %v3124_v29 = vrot.slane %v669_v24, %v681_v25  ;;  %v3126_v30 = vrot.slane %v669_v24, %v677_v26  ;;  %v3128_v31 = vrot.slane %v669_v24, %v685_v27 }
 0x130   : > { %908 = vmatpush1.bf16.msra.mxu0 %v2345_v54  ;;  %1021 = vmatpush1.bf16.msra.mxu1 %v2347_v55 }
 0x131   : > { %909 = vmatprep.subr.bf16.mxu0 %v2342_v56  ;;  %1022 = vmatprep.subr.bf16.mxu1 %v2344_v57 }
 0x134   : > { %910 = vmatpush1.bf16.msra.mxu0 %v2341_v62  ;;  %1023 = vmatpush1.bf16.msra.mxu1 %v2343_v63 }
 0x135   : > { %911 = vmatprep.subr.bf16.mxu0 %v2338_v0  ;;  %1024 = vmatprep.subr.bf16.mxu1 %v2340_v1 }
 0x138   : > { %912 = vmatpush1.bf16.msra.mxu0 %v2337_v6  ;;  %1025 = vmatpush1.bf16.msra.mxu1 %v2339_v7 }
 0x139   : > { %913 = vmatprep.subr.bf16.mxu0 %v2334_v8  ;;  %1026 = vmatprep.subr.bf16.mxu1 %v2336_v9 }
 0x13c   : > { %914 = vmatpush1.bf16.msra.mxu0 %v2333_v10  ;;  %1027 = vmatpush1.bf16.msra.mxu1 %v2335_v12 }
 0x13f   : > { %932 = vmatmul.mubr.bf16.vlgmr.msra.gmra.mxu0 %v2595_v13  ;;  %1045 = vmatmul.mubr.bf16.vlgmr.msra.gmra.mxu1 %v2595_v13 }
 0x140   : > { %941 = vmatprep.mubr.bf16.mxu0 %v2873_v11  ;;  %1054 = vmatprep.mubr.bf16.mxu1 %v2873_v11 }
 0x147   : > { %942 = vmatmul.mubr.bf16.gmra.mxu0 %v2596_v14  ;;  %1055 = vmatmul.mubr.bf16.gmra.mxu1 %v2596_v14 }
 0x148   : > { %951 = vmatprep.mubr.bf16.mxu0 %v2873_v11  ;;  %1064 = vmatprep.mubr.bf16.mxu1 %v2873_v11 }
 0x14f   : > { %952 = vmatmul.mubr.bf16.gmra.mxu0 %v2597_v15  ;;  %1065 = vmatmul.mubr.bf16.gmra.mxu1 %v2597_v15 }
 0x150   : > { %961 = vmatprep.mubr.bf16.mxu0 %v2873_v11  ;;  %1074 = vmatprep.mubr.bf16.mxu1 %v2873_v11 }
 0x157   : > { %962 = vmatmul.mubr.bf16.gmra.mxu0 %v2598_v16  ;;  %1075 = vmatmul.mubr.bf16.gmra.mxu1 %v2598_v16 }
 0x158   : > { %971 = vmatprep.mubr.bf16.mxu0 %v2873_v11  ;;  %1084 = vmatprep.mubr.bf16.mxu1 %v2873_v11 }
 0x15f   : > { %972 = vmatmul.mubr.bf16.gmra.mxu0 %v2599_v17  ;;  %1085 = vmatmul.mubr.bf16.gmra.mxu1 %v2599_v17 }
 0x160   : > { %981 = vmatprep.mubr.bf16.mxu0 %v2873_v11  ;;  %1094 = vmatprep.mubr.bf16.mxu1 %v2873_v11 }
 0x167   : > { %982 = vmatmul.mubr.bf16.gmra.mxu0 %v2600_v18  ;;  %1095 = vmatmul.mubr.bf16.gmra.mxu1 %v2600_v18 }
 0x168   : > { %991 = vmatprep.mubr.bf16.mxu0 %v2873_v11  ;;  %1104 = vmatprep.mubr.bf16.mxu1 %v2873_v11 }
 0x16f   : > { %992 = vmatmul.mubr.bf16.gmra.mxu0 %v2601_v19  ;;  %1105 = vmatmul.mubr.bf16.gmra.mxu1 %v2601_v19 }
 0x170   : > { %1001 = vmatprep.mubr.bf16.mxu0 %v2873_v11  ;;  %1114 = vmatprep.mubr.bf16.mxu1 %v2873_v11 }
 0x177   : > { %1002 = vmatmul.mubr.bf16.gmra.mxu0 %v2602_v20  ;;  %1115 = vmatmul.mubr.bf16.gmra.mxu1 %v2602_v20 }
 0x1ff   : > { %v933_v11 = vpop.f32.mrf.mxu0  ;;  %v1046_v33 = vpop.f32.mrf.mxu1 }
 0x200   : > { %v3131_v32 = vadd.f32 %v933_v11, %v3122_v28  ;;  %v3134_v34 = vadd.f32 %v1046_v33, %v3124_v29 }
 0x201   : > { %v935_v35 = vpop.f32.mrf.mxu0  ;;  %v1048_v37 = vpop.f32.mrf.mxu1 }
 0x202   : > { %4178 = vst [vmem:[#allocation7_spill] sm:$0xff] %v3131_v32  ;;  %4179 = vst [vmem:[#allocation8_spill] sm:$0xff] %v3134_v34  ;;  %v3137_v36 = vadd.f32 %v935_v35, %v3126_v30  ;;  %v3140_v38 = vadd.f32 %v1048_v37, %v3128_v31 }
 0x203   : > { %v937_v39 = vpop.f32.mrf.mxu0  ;;  %v1050_v41 = vpop.f32.mrf.mxu1 }
 0x204   : > { %4180 = vst [vmem:[#allocation9_spill] sm:$0xff] %v3137_v36  ;;  %v3143_v40 = vadd.f32 %v937_v39, %v3122_v28  ;;  %v3146_v42 = vadd.f32 %v1050_v41, %v3124_v29 }
 0x205   : > { %v939_v43 = vpop.f32.mrf.mxu0  ;;  %v1052_v45 = vpop.f32.mrf.mxu1 }
 0x206   : > { %4181 = vst [vmem:[#allocation10_spill] sm:$0xff] %v3143_v40  ;;  %4182 = vst [vmem:[#allocation11_spill] sm:$0xff] %v3146_v42  ;;  %v3149_v44 = vadd.f32 %v939_v43, %v3126_v30  ;;  %v3152_v46 = vadd.f32 %v1052_v45, %v3128_v31 }
 0x207   : > { %v943_v47 = vpop.f32.mrf.mxu0  ;;  %v1056_v49 = vpop.f32.mrf.mxu1 }
 0x208   : > { %v3155_v48 = vadd.f32 %v943_v47, %v3122_v28  ;;  %v3158_v50 = vadd.f32 %v1056_v49, %v3124_v29 }
 0x209   : > { %v945_v51 = vpop.f32.mrf.mxu0  ;;  %v1058_v53 = vpop.f32.mrf.mxu1 }
 0x20a   : > { %4183 = vst [vmem:[#allocation12_spill] sm:$0xff] %v3155_v48  ;;  %v3161_v52 = vadd.f32 %v945_v51, %v3126_v30  ;;  %v3164_v54 = vadd.f32 %v1058_v53, %v3128_v31 }
 0x20b   : > { %v947_v55 = vpop.f32.mrf.mxu0  ;;  %v1060_v57 = vpop.f32.mrf.mxu1 }
 0x20c   : > { %4184 = vst [vmem:[#allocation13_spill] sm:$0xff] %v3161_v52  ;;  %v3167_v56 = vadd.f32 %v947_v55, %v3122_v28  ;;  %v3170_v58 = vadd.f32 %v1060_v57, %v3124_v29 }
 0x20d   : > { %v949_v59 = vpop.f32.mrf.mxu0  ;;  %v1062_v61 = vpop.f32.mrf.mxu1 }
 0x20e   : > { %4185 = vst [vmem:[#allocation14_spill] sm:$0xff] %v3167_v56  ;;  %v3173_v60 = vadd.f32 %v949_v59, %v3126_v30  ;;  %v3176_v62 = vadd.f32 %v1062_v61, %v3128_v31 }
 0x20f   : > { %v953_v63 = vpop.f32.mrf.mxu0  ;;  %v1066_v1 = vpop.f32.mrf.mxu1 }
 0x210   : > { %4186 = vst [vmem:[#allocation15_spill] sm:$0xff] %v3173_v60  ;;  %v3179_v0 = vadd.f32 %v953_v63, %v3122_v28  ;;  %v3182_v2 = vadd.f32 %v1066_v1, %v3124_v29 }
 0x211   : > { %v955_v3 = vpop.f32.mrf.mxu0  ;;  %v1068_v5 = vpop.f32.mrf.mxu1 }
 0x212   : > { %4187 = vst [vmem:[#allocation16_spill] sm:$0xff] %v3179_v0  ;;  %4188 = vst [vmem:[#allocation17_spill] sm:$0xff] %v3182_v2  ;;  %v3185_v4 = vadd.f32 %v955_v3, %v3126_v30  ;;  %v3188_v6 = vadd.f32 %v1068_v5, %v3128_v31 }
 0x213   : > { %v957_v7 = vpop.f32.mrf.mxu0  ;;  %v1070_v9 = vpop.f32.mrf.mxu1 }
 0x214   : > { %4189 = vst [vmem:[#allocation18_spill] sm:$0xff] %v3185_v4  ;;  %4190 = vst [vmem:[#allocation19_spill] sm:$0xff] %v3188_v6  ;;  %v3191_v8 = vadd.f32 %v957_v7, %v3122_v28  ;;  %v3194_v10 = vadd.f32 %v1070_v9, %v3124_v29 }
 0x215   : > { %v959_v12 = vpop.f32.mrf.mxu0  ;;  %v1072_v14 = vpop.f32.mrf.mxu1 }
 0x216   : > { %4191 = vst [vmem:[#allocation20_spill] sm:$0xff] %v3191_v8  ;;  %4192 = vst [vmem:[#allocation21_spill] sm:$0xff] %v3194_v10  ;;  %v3197_v13 = vadd.f32 %v959_v12, %v3126_v30  ;;  %v3200_v15 = vadd.f32 %v1072_v14, %v3128_v31 }
 0x217   : > { %v963_v16 = vpop.f32.mrf.mxu0  ;;  %v1076_v18 = vpop.f32.mrf.mxu1 }
 0x218   : > { %4193 = vst [vmem:[#allocation22_spill] sm:$0xff] %v3197_v13  ;;  %4194 = vst [vmem:[#allocation23_spill] sm:$0xff] %v3200_v15  ;;  %v3203_v17 = vadd.f32 %v963_v16, %v3122_v28  ;;  %v3206_v19 = vadd.f32 %v1076_v18, %v3124_v29 }
 0x219   : > { %v965_v20 = vpop.f32.mrf.mxu0  ;;  %v1078_v22 = vpop.f32.mrf.mxu1 }
 0x21a   : > { %4195 = vst [vmem:[#allocation24_spill] sm:$0xff] %v3203_v17  ;;  %v3209_v21 = vadd.f32 %v965_v20, %v3126_v30  ;;  %v3212_v23 = vadd.f32 %v1078_v22, %v3128_v31 }
 0x21b   : > { %v967_v24 = vpop.f32.mrf.mxu0  ;;  %v1080_v26 = vpop.f32.mrf.mxu1 }
 0x21c   : > { %4196 = vst [vmem:[#allocation25_spill] sm:$0xff] %v3209_v21  ;;  %v3215_v25 = vadd.f32 %v967_v24, %v3122_v28  ;;  %v3218_v27 = vadd.f32 %v1080_v26, %v3124_v29 }
 0x21d   : > { %v969_v11 = vpop.f32.mrf.mxu0  ;;  %v1082_v35 = vpop.f32.mrf.mxu1 }
 0x21e   : > { %v3221_v33 = vadd.f32 %v969_v11, %v3126_v30  ;;  %v3224_v37 = vadd.f32 %v1082_v35, %v3128_v31 }
 0x21f   : > { %v973_v39 = vpop.f32.mrf.mxu0  ;;  %v1086_v43 = vpop.f32.mrf.mxu1 }
 0x220   : > { %v3227_v41 = vadd.f32 %v973_v39, %v3122_v28  ;;  %v3230_v45 = vadd.f32 %v1086_v43, %v3124_v29 }
 0x221   : > { %v975_v47 = vpop.f32.mrf.mxu0  ;;  %v1088_v51 = vpop.f32.mrf.mxu1 }
 0x222   : > { %4197 = vst [vmem:[#allocation26_spill] sm:$0xff] %v3227_v41  ;;  %4198 = vst [vmem:[#allocation27_spill] sm:$0xff] %v3230_v45  ;;  %v3233_v49 = vadd.f32 %v975_v47, %v3126_v30  ;;  %v3236_v53 = vadd.f32 %v1088_v51, %v3128_v31 }
 0x223   : > { %v977_v55 = vpop.f32.mrf.mxu0  ;;  %v1090_v59 = vpop.f32.mrf.mxu1 }
 0x224   : > { %4199 = vst [vmem:[#allocation28_spill] sm:$0xff] %v3233_v49  ;;  %4200 = vst [vmem:[#allocation29_spill] sm:$0xff] %v3236_v53  ;;  %v3239_v57 = vadd.f32 %v977_v55, %v3122_v28  ;;  %v3242_v61 = vadd.f32 %v1090_v59, %v3124_v29 }
 0x225   : > { %v979_v63 = vpop.f32.mrf.mxu0  ;;  %v1092_v3 = vpop.f32.mrf.mxu1 }
 0x226   : > { %4201 = vst [vmem:[#allocation30_spill] sm:$0xff] %v3239_v57  ;;  %4202 = vst [vmem:[#allocation31_spill] sm:$0xff] %v3242_v61  ;;  %v3245_v1 = vadd.f32 %v979_v63, %v3126_v30  ;;  %v3248_v5 = vadd.f32 %v1092_v3, %v3128_v31 }
 0x227   : > { %v983_v7 = vpop.f32.mrf.mxu0  ;;  %v1096_v12 = vpop.f32.mrf.mxu1 }
 0x228   : > { %4203 = vst [vmem:[#allocation32_spill] sm:$0xff] %v3245_v1  ;;  %4204 = vst [vmem:[#allocation33_spill] sm:$0xff] %v3248_v5  ;;  %v3251_v9 = vadd.f32 %v983_v7, %v3122_v28  ;;  %v3254_v14 = vadd.f32 %v1096_v12, %v3124_v29 }
 0x229   : > { %v985_v16 = vpop.f32.mrf.mxu0  ;;  %v1098_v20 = vpop.f32.mrf.mxu1 }
 0x22a   : > { %4205 = vst [vmem:[#allocation34_spill] sm:$0xff] %v3251_v9  ;;  %4206 = vst [vmem:[#allocation35_spill] sm:$0xff] %v3254_v14  ;;  %v3257_v18 = vadd.f32 %v985_v16, %v3126_v30  ;;  %v3260_v22 = vadd.f32 %v1098_v20, %v3128_v31 }
 0x22b   : > { %v987_v24 = vpop.f32.mrf.mxu0  ;;  %v1100_v11 = vpop.f32.mrf.mxu1 }
 0x22c   : > { %4207 = vst [vmem:[#allocation36_spill] sm:$0xff] %v3257_v18  ;;  %4208 = vst [vmem:[#allocation37_spill] sm:$0xff] %v3260_v22  ;;  %v3263_v26 = vadd.f32 %v987_v24, %v3122_v28  ;;  %v3266_v35 = vadd.f32 %v1100_v11, %v3124_v29 }
 0x22d   : > { %v989_v39 = vpop.f32.mrf.mxu0  ;;  %v1102_v47 = vpop.f32.mrf.mxu1 }
 0x22e   : > { %4209 = vst [vmem:[#allocation38_spill] sm:$0xff] %v3263_v26  ;;  %4210 = vst [vmem:[#allocation39_spill] sm:$0xff] %v3266_v35  ;;  %v3269_v43 = vadd.f32 %v989_v39, %v3126_v30  ;;  %v3272_v51 = vadd.f32 %v1102_v47, %v3128_v31 }
 0x22f   : > { %v993_v55 = vpop.f32.mrf.mxu0  ;;  %v1106_v63 = vpop.f32.mrf.mxu1 }
 0x230   : > { %4211 = vst [vmem:[#allocation40_spill] sm:$0xff] %v3269_v43  ;;  %4212 = vst [vmem:[#allocation41_spill] sm:$0xff] %v3272_v51  ;;  %v3275_v59 = vadd.f32 %v993_v55, %v3122_v28  ;;  %v3278_v3 = vadd.f32 %v1106_v63, %v3124_v29 }
 0x231   : > { %v995_v7 = vpop.f32.mrf.mxu0  ;;  %v1108_v16 = vpop.f32.mrf.mxu1 }
 0x232   : > { %4213 = vst [vmem:[#allocation42_spill] sm:$0xff] %v3275_v59  ;;  %4214 = vst [vmem:[#allocation43_spill] sm:$0xff] %v3278_v3  ;;  %v3281_v12 = vadd.f32 %v995_v7, %v3126_v30  ;;  %v3284_v20 = vadd.f32 %v1108_v16, %v3128_v31 }
 0x233   : > { %v997_v24 = vpop.f32.mrf.mxu0  ;;  %v1110_v39 = vpop.f32.mrf.mxu1 }
 0x234   : > { %4215 = vst [vmem:[#allocation44_spill] sm:$0xff] %v3281_v12  ;;  %4216 = vst [vmem:[#allocation45_spill] sm:$0xff] %v3284_v20  ;;  %v3287_v11 = vadd.f32 %v997_v24, %v3122_v28  ;;  %v3290_v47 = vadd.f32 %v1110_v39, %v3124_v29 }
 0x235   : > { %v999_v55 = vpop.f32.mrf.mxu0  ;;  %v1112_v3 = vpop.f32.mrf.mxu1 }
 0x236   : > { %4217 = vst [vmem:[#allocation46_spill] sm:$0xff] %v3287_v11  ;;  %4218 = vst [vmem:[#allocation47_spill] sm:$0xff] %v3290_v47  ;;  %v3293_v63 = vadd.f32 %v999_v55, %v3126_v30  ;;  %v3296_v7 = vadd.f32 %v1112_v3, %v3128_v31 }
 0x237   : > { %v1003_v22 = vpop.f32.mrf.mxu0  ;;  %v1116_v20 = vpop.f32.mrf.mxu1 }
 0x238   : > { %4219 = vst [vmem:[#allocation48_spill] sm:$0xff] %v3296_v7  ;;  %v3299_v16 = vadd.f32 %v1003_v22, %v3122_v28  ;;  %v3302_v24 = vadd.f32 %v1116_v20, %v3124_v29 }
 0x239   : > { %v1005_v51 = vpop.f32.mrf.mxu0  ;;  %v1118_v47 = vpop.f32.mrf.mxu1 }
 0x23a   : > { %4220 = vst [vmem:[#allocation49_spill] sm:$0xff] %v3299_v16  ;;  %4221 = vst [vmem:[#allocation50_spill] sm:$0xff] %v3302_v24  ;;  %v3305_v39 = vadd.f32 %v1005_v51, %v3126_v30  ;;  %v3308_v55 = vadd.f32 %v1118_v47, %v3128_v31 }
 0x23b   : > { %v1007_v14 = vpop.f32.mrf.mxu0  ;;  %v1120_v7 = vpop.f32.mrf.mxu1 }
 0x23c   : > { %4222 = vst [vmem:[#allocation51_spill] sm:$0xff] %v3308_v55  ;;  %v3311_v3 = vadd.f32 %v1007_v14, %v3122_v28  ;;  %v3314_v22 = vadd.f32 %v1120_v7, %v3124_v29  ;;  %1127 = sbr.rel (%p2365_p0) target bundleno = 1073 (0x431), region = 48 }
 0x23d   : > { %v1009_v16 = vpop.f32.mrf.mxu0  ;;  %v1122_v24 = vpop.f32.mrf.mxu1 }
 0x23e   : > { %4223 = vst [vmem:[#allocation52_spill] sm:$0xff] %v3311_v3  ;;  %4224 = vst [vmem:[#allocation53_spill] sm:$0xff] %v3314_v22  ;;  %v3317_v20 = vadd.f32 %v1009_v16, %v3126_v30  ;;  %v3320_v51 = vadd.f32 %v1122_v24, %v3128_v31 }
 0x240   : > { %4225 = vst [vmem:[#allocation54_spill] sm:$0xff] %v3317_v20 }
 0x241   : > { %v1154_v47 = vmax.f32 %v3155_v48, %v3161_v52  ;;  %v1144_v28 = vmax.f32 %v3131_v32, %v3137_v36  ;;  %v1159_v29 = vmax.f32 %v3167_v56, %v3173_v60  ;;  %v1149_v30 = vmax.f32 %v3143_v40, %v3149_v44 }
 0x242   : > { %v1169_v14 = vmax.f32 %v3191_v8, %v3197_v13  ;;  %v1164_v31 = vmax.f32 %v3179_v0, %v3185_v4  ;;  %v1179_v13 = vmax.f32 %v3215_v25, %v3221_v33  ;;  %vm1688_vm1 = vcmask 7168  }
 0x243   : > { %v1155_v7 = vmax.f32 %v1154_v47, %v3158_v50  ;;  %v1145_v16 = vmax.f32 %v1144_v28, %v3134_v34  ;;  %v1160_v24 = vmax.f32 %v1159_v29, %v3170_v58  ;;  %v1150_v52 = vmax.f32 %v1149_v30, %v3146_v42 }
 0x244   : > { %v1170_v56 = vmax.f32 %v1169_v14, %v3194_v10  ;;  %v1165_v8 = vmax.f32 %v1164_v31, %v3182_v2  ;;  %v1174_v29 = vmax.f32 %v3203_v17, %v3209_v21  ;;  %v1189_v14 = vmax.f32 %v3239_v57, %v3245_v1 }
 0x245   : > { %v1156_v48 = vmax.f32 %v1155_v7, %v3164_v54  ;;  %v1146_v60 = vmax.f32 %v1145_v16, %v3140_v38  ;;  %v1161_v47 = vmax.f32 %v1160_v24, %v3176_v62  ;;  %v1151_v28 = vmax.f32 %v1150_v52, %v3152_v46 }
 0x246   : > { %v1171_v30 = vmax.f32 %v1170_v56, %v3200_v15  ;;  %v1180_v7 = vmax.f32 %v1179_v13, %v3218_v27  ;;  %v1166_v31 = vmax.f32 %v1165_v8, %v3188_v6  ;;  %v1190_v16 = vmax.f32 %v1189_v14, %v3242_v61  ;;  %v4226_v14 = vld [vmem:[#allocation35_spill] sm:$0xff] }
 0x247   : > { %1157 = vmax.xlane.f32.xlu1 %v1156_v48  ;;  %1147 = vmax.xlane.f32.xlu0 %v1146_v60  ;;  %v1175_v48 = vmax.f32 %v1174_v29, %v3206_v19  ;;  %v1184_v60 = vmax.f32 %v3227_v41, %v3233_v49  ;;  %v1199_v56 = vmax.f32 %v3263_v26, %v3269_v43  ;;  %v4234_v49 = vld [vmem:[#allocation50_spill] sm:$0xff] }
 0x248   : > { %v1181_v52 = vmax.f32 %v1180_v7, %v3224_v37  ;;  %v1194_v8 = vmax.f32 %v3251_v9, %v3257_v18  ;;  %v1204_v29 = vmax.f32 %v3275_v59, %v3281_v12  ;;  %v4228_v9 = vld [vmem:[#allocation49_spill] sm:$0xff] }
 0x249   : > { %v1176_v13 = vmax.f32 %v1175_v48, %v3212_v23  ;;  %v1185_v24 = vmax.f32 %v1184_v60, %v3230_v45  ;;  %v1200_v7 = vmax.f32 %v1199_v56, %v3266_v35  ;;  %v2874_v48 = vmov 0   ;;  %v4227_v60 = vld [vmem:[#allocation47_spill] sm:$0xff]  ;;  %v4230_v56 = vld [vmem:[#allocation37_spill] sm:$0xff] }
 0x24a   : > { %2603 = vset.pattern.permute.xlu0 %v2874_v48  ;;  %2604 = vset.pattern.permute.xlu1 %v2874_v48  ;;  %v1214_v45 = vmax.f32 %v4228_v9, %v3305_v39  ;;  %v4232_v48 = vld [vmem:[#allocation48_spill] sm:$0xff] }
 0x24b   : > { %1162 = vmax.xlane.f32.xlu1 %v1161_v47  ;;  %1152 = vmax.xlane.f32.xlu0 %v1151_v28  ;;  %v1191_v47 = vmax.f32 %v1190_v16, %v3248_v5  ;;  %v1209_v28 = vmax.f32 %v3287_v11, %v3293_v63  ;;  %v1219_v16 = vmax.f32 %v3311_v3, %v3317_v20 }
 0x24c   : > { %v1215_v41 = vmax.f32 %v1214_v45, %v4234_v49 }
 0x24d   : > { %v1210_v18 = vmax.f32 %v1209_v28, %v4227_v60  ;;  %v4233_v28 = vld [vmem:[#allocation45_spill] sm:$0xff] }
 0x24f   : > { %1172 = vmax.xlane.f32.xlu1 %v1171_v30  ;;  %1167 = vmax.xlane.f32.xlu0 %v1166_v31  ;;  %v1186_v30 = vmax.f32 %v1185_v24, %v3236_v53  ;;  %v1195_v31 = vmax.f32 %v1194_v8, %v4226_v14  ;;  %v4231_v24 = vld [vmem:[#allocation43_spill] sm:$0xff]  ;;  %v1220_v8 = vmax.f32 %v1219_v16, %v3314_v22 }
 0x250   : > { %v1205_v59 = vmax.f32 %v1204_v29, %v4231_v24  ;;  %v1211_v14 = vmax.f32 %v1210_v18, %v4232_v48  ;;  %v3389_v29 = vld [vmem:[#allocation3] sm:$0xff] }
 0x251   : > { %4236 = vst [vmem:[#allocation56_spill] sm:$0xff] %v3389_v29 }
 0x252   : > { %v1206_v53 = vmax.f32 %v1205_v59, %v4233_v28  ;;  %v3397_v59 = vld [vmem:[#allocation3 + $0x18] sm:$0xff] }
 0x253   : > { %1182 = vmax.xlane.f32.xlu1 %v1181_v52  ;;  %1177 = vmax.xlane.f32.xlu0 %v1176_v13  ;;  %v4229_v52 = vld [vmem:[#allocation41_spill] sm:$0xff]  ;;  %v1196_v13 = vmax.f32 %v1195_v31, %v4230_v56  ;;  %4239 = vst [vmem:[#allocation59_spill] sm:$0xff] %v3397_v59 }
 0x254   : > { %v1201_v12 = vmax.f32 %v1200_v7, %v4229_v52  ;;  %v1216_v7 = vmax.f32 %v1215_v41, %v3308_v55  ;;  %v3454_v41 = vld [vmem:[#allocation3 + $0x48] sm:$0xff]  ;;  %v3495_v55 = vld [vmem:[#allocation3 + $0x60] sm:$0xff] }
 0x255   : > { %4249 = vst [vmem:[#allocation69_spill] sm:$0xff] %v3454_v41  ;;  %4258 = vst [vmem:[#allocation78_spill] sm:$0xff] %v3495_v55 }
 0x257   : > { %1192 = vmax.xlane.f32.xlu1 %v1191_v47  ;;  %1187 = vmax.xlane.f32.xlu0 %v1186_v30  ;;  %v1221_v47 = vmax.f32 %v1220_v8, %v3320_v51  ;;  %v3387_v30 = vld [vmem:[#allocation3 + $0x10] sm:$0xff] }
 0x258   : > { %4235 = vst [vmem:[#allocation55_spill] sm:$0xff] %v3387_v30 }
 0x25b   : > { %1202 = vmax.xlane.f32.xlu1 %v1201_v12  ;;  %1197 = vmax.xlane.f32.xlu0 %v1196_v13 }
 0x25f   : > { %1212 = vmax.xlane.f32.xlu1 %v1211_v14  ;;  %1207 = vmax.xlane.f32.xlu0 %v1206_v53  ;;  %v3399_v53 = vld [vmem:[#allocation3 + $0x8] sm:$0xff] }
 0x260   : > { %4240 = vst [vmem:[#allocation60_spill] sm:$0xff] %v3399_v53 }
 0x263   : > { %1222 = vmax.xlane.f32.xlu1 %v1221_v47  ;;  %1217 = vmax.xlane.f32.xlu0 %v1216_v7  ;;  %v3416_v7 = vld [vmem:[#allocation3 + $0x28] sm:$0xff] }
 0x264   : > { %4243 = vst [vmem:[#allocation63_spill] sm:$0xff] %v3416_v7 }
 0x2d0   : > { %v1158_v12 = vpop.xlane.xlu1 %1157  ;;  %v1148_v18 = vpop.xlane.xlu0 %1147 }
 0x2d1   : > { %v3392_v31 = vmax.f32 %v3387_v30, %v1158_v12  ;;  %v3395_v45 = vmax.f32 %v3389_v29, %v1148_v18  ;;  %v3418_v12 = vld [vmem:[#allocation3 + $0x20] sm:$0xff]  ;;  %v3435_v18 = vld [vmem:[#allocation3 + $0x38] sm:$0xff] }
 0x2d2   : > { %4244 = vst [vmem:[#allocation64_spill] sm:$0xff] %v3418_v12  ;;  %4246 = vst [vmem:[#allocation66_spill] sm:$0xff] %v3435_v18 }
 0x2d3   : > { %4237 = vst [vmem:[#allocation57_spill] sm:$0xff] %v3392_v31  ;;  %4238 = vst [vmem:[#allocation58_spill] sm:$0xff] %v3395_v45  ;;  %1322 = vperm.xlu0 %2603, %v3395_v45  }
 0x2d4   : > { %1707 = vst.msk [vmem:[#allocation3 + $0x10] sm:$0xff] %vm1688_vm1, %v3392_v31  ;;  %1705 = vst.msk [vmem:[#allocation3] sm:$0xff] %vm1688_vm1, %v3395_v45  ;;  %v1163_v16 = vpop.xlane.xlu1 %1162  ;;  %v1153_v13 = vpop.xlane.xlu0 %1152 }
 0x2d5   : > { %v3411_v8 = vmax.f32 %v3397_v59, %v1163_v16  ;;  %v3414_v47 = vmax.f32 %v3399_v53, %v1153_v13  ;;  %v3437_v59 = vld [vmem:[#allocation3 + $0x30] sm:$0xff] }
 0x2d6   : > { %4247 = vst [vmem:[#allocation67_spill] sm:$0xff] %v3437_v59 }
 0x2d7   : > { %4241 = vst [vmem:[#allocation61_spill] sm:$0xff] %v3411_v8  ;;  %4242 = vst [vmem:[#allocation62_spill] sm:$0xff] %v3414_v47  ;;  %1327 = vperm.xlu1 %2604, %v3414_v47  }
 0x2d8   : > { %1708 = vst.msk [vmem:[#allocation3 + $0x18] sm:$0xff] %vm1688_vm1, %v3411_v8  ;;  %1706 = vst.msk [vmem:[#allocation3 + $0x8] sm:$0xff] %vm1688_vm1, %v3414_v47  ;;  %v1173_v16 = vpop.xlane.xlu1 %1172  ;;  %v1168_v13 = vpop.xlane.xlu0 %1167 }
 0x2d9   : > { %v3430_v14 = vmax.f32 %v3416_v7, %v1173_v16  ;;  %v3433_v30 = vmax.f32 %v3418_v12, %v1168_v13  ;;  %v3456_v7 = vld [vmem:[#allocation3 + $0x40] sm:$0xff] }
 0x2da   : > { %4250 = vst [vmem:[#allocation70_spill] sm:$0xff] %v3456_v7 }
 0x2db   : > { %4245 = vst [vmem:[#allocation65_spill] sm:$0xff] %v3433_v30  ;;  %1710 = vst.msk [vmem:[#allocation3 + $0x28] sm:$0xff] %vm1688_vm1, %v3430_v14  ;;  %1332 = vperm.xlu1 %2604, %v3392_v31   ;;  %v3473_v31 = vld [vmem:[#allocation3 + $0x58] sm:$0xff] }
 0x2dc   : > { %1709 = vst.msk [vmem:[#allocation3 + $0x20] sm:$0xff] %vm1688_vm1, %v3433_v30  ;;  %v1183_v16 = vpop.xlane.xlu1 %1182  ;;  %v1178_v13 = vpop.xlane.xlu0 %1177  ;;  %4253 = vst [vmem:[#allocation73_spill] sm:$0xff] %v3473_v31 }
 0x2dd   : > { %v3449_v53 = vmax.f32 %v3435_v18, %v1183_v16  ;;  %v3452_v45 = vmax.f32 %v3437_v59, %v1178_v13  ;;  %v3475_v18 = vld [vmem:[#allocation3 + $0x50] sm:$0xff] }
 0x2de   : > { %4254 = vst [vmem:[#allocation74_spill] sm:$0xff] %v3475_v18 }
 0x2df   : > { %4248 = vst [vmem:[#allocation68_spill] sm:$0xff] %v3449_v53  ;;  %1712 = vst.msk [vmem:[#allocation3 + $0x38] sm:$0xff] %vm1688_vm1, %v3449_v53  ;;  %1337 = vperm.xlu1 %2604, %v3411_v8  }
 0x2e0   : > { %1711 = vst.msk [vmem:[#allocation3 + $0x30] sm:$0xff] %vm1688_vm1, %v3452_v45  ;;  %v1193_v16 = vpop.xlane.xlu1 %1192  ;;  %v1188_v13 = vpop.xlane.xlu0 %1187 }
 0x2e1   : > { %v3468_v12 = vmax.f32 %v3454_v41, %v1193_v16  ;;  %v3471_v29 = vmax.f32 %v3456_v7, %v1188_v13  ;;  %v3493_v41 = vld [vmem:[#allocation3 + $0x68] sm:$0xff] }
 0x2e2   : > { %4257 = vst [vmem:[#allocation77_spill] sm:$0xff] %v3493_v41 }
 0x2e3   : > { %4251 = vst [vmem:[#allocation71_spill] sm:$0xff] %v3468_v12  ;;  %4252 = vst [vmem:[#allocation72_spill] sm:$0xff] %v3471_v29  ;;  %1342 = vperm.xlu1 %2604, %v3433_v30   ;;  %1367 = vperm.xlu0 %2603, %v3468_v12   ;;  %v3515_v30 = vld [vmem:[#allocation3 + $0x70] sm:$0xff] }
 0x2e4   : > { %1714 = vst.msk [vmem:[#allocation3 + $0x48] sm:$0xff] %vm1688_vm1, %v3468_v12  ;;  %1713 = vst.msk [vmem:[#allocation3 + $0x40] sm:$0xff] %vm1688_vm1, %v3471_v29  ;;  %v1203_v13 = vpop.xlane.xlu1 %1202  ;;  %v1198_v47 = vpop.xlane.xlu0 %1197 }
 0x2e5   : > { %v3488_v59 = vmax.f32 %v3473_v31, %v1203_v13  ;;  %v3491_v8 = vmax.f32 %v3475_v18, %v1198_v47  ;;  %v3513_v31 = vld [vmem:[#allocation3 + $0x78] sm:$0xff]  ;;  %4262 = vst [vmem:[#allocation82_spill] sm:$0xff] %v3515_v30 }
 0x2e6   : > { %4261 = vst [vmem:[#allocation81_spill] sm:$0xff] %v3513_v31 }
 0x2e7   : > { %4255 = vst [vmem:[#allocation75_spill] sm:$0xff] %v3488_v59  ;;  %4256 = vst [vmem:[#allocation76_spill] sm:$0xff] %v3491_v8  ;;  %1347 = vperm.xlu1 %2604, %v3430_v14   ;;  %1377 = vperm.xlu0 %2603, %v3488_v59  }
 0x2e8   : > { %1716 = vst.msk [vmem:[#allocation3 + $0x58] sm:$0xff] %vm1688_vm1, %v3488_v59  ;;  %1715 = vst.msk [vmem:[#allocation3 + $0x50] sm:$0xff] %vm1688_vm1, %v3491_v8  ;;  %v1213_v47 = vpop.xlane.xlu1 %1212  ;;  %v1208_v16 = vpop.xlane.xlu0 %1207 }
 0x2e9   : > { %v3508_v7 = vmax.f32 %v3493_v41, %v1213_v47  ;;  %v3511_v12 = vmax.f32 %v3495_v55, %v1208_v16 }
 0x2eb   : > { %4259 = vst [vmem:[#allocation79_spill] sm:$0xff] %v3508_v7  ;;  %4260 = vst [vmem:[#allocation80_spill] sm:$0xff] %v3511_v12  ;;  %1352 = vperm.xlu1 %2604, %v3452_v45   ;;  %1387 = vperm.xlu0 %2603, %v3508_v7  }
 0x2ec   : > { %1718 = vst.msk [vmem:[#allocation3 + $0x68] sm:$0xff] %vm1688_vm1, %v3508_v7  ;;  %1717 = vst.msk [vmem:[#allocation3 + $0x60] sm:$0xff] %vm1688_vm1, %v3511_v12  ;;  %v1223_v16 = vpop.xlane.xlu1 %1222  ;;  %v1218_v13 = vpop.xlane.xlu0 %1217 }
 0x2ed   : > { %v3528_v18 = vmax.f32 %v3513_v31, %v1223_v16  ;;  %v3531_v59 = vmax.f32 %v3515_v30, %v1218_v13 }
 0x2ef   : > { %4263 = vst [vmem:[#allocation83_spill] sm:$0xff] %v3528_v18  ;;  %4264 = vst [vmem:[#allocation84_spill] sm:$0xff] %v3531_v59  ;;  %1357 = vperm.xlu1 %2604, %v3449_v53   ;;  %1397 = vperm.xlu0 %2603, %v3528_v18  }
 0x2f0   : > { %1720 = vst.msk [vmem:[#allocation3 + $0x78] sm:$0xff] %vm1688_vm1, %v3528_v18  ;;  %1719 = vst.msk [vmem:[#allocation3 + $0x70] sm:$0xff] %vm1688_vm1, %v3531_v59 }
 0x2f3   : > { %1362 = vperm.xlu1 %2604, %v3471_v29  }
 0x2f7   : > { %1372 = vperm.xlu1 %2604, %v3491_v8  }
 0x2fb   : > { %1382 = vperm.xlu1 %2604, %v3511_v12  }
 0x2ff   : > { %1392 = vperm.xlu1 %2604, %v3531_v59  }
 0x34e   : > { %v1323_v13 = vpop.permute.xlu0 %1322 }
 0x34f   : > { %v1400_v16 = vsub.f32 %v3131_v32, %v1323_v13  ;;  %v1401_v41 = vsub.f32 %v3137_v36, %v1323_v13  ;;  %v1402_v18 = vsub.f32 %v3134_v34, %v1323_v13  ;;  %v1403_v47 = vsub.f32 %v3140_v38, %v1323_v13 }
 0x351   : > { %v1464_v30 = vmul.f32 1.442695, %v1400_v16  ;;  %v1466_v31 = vmul.f32 1.442695, %v1401_v41  ;;  %v1468_v55 = vmul.f32 1.442695, %v1402_v18 }
 0x352   : > { %v1470_v7 = vmul.f32 1.442695, %v1403_v47  ;;  %v1328_v29 = vpop.permute.xlu1 %1327  ;;  %v4265_v18 = vld [vmem:[#allocation12_spill] sm:$0xff] }
 0x353   : > { %2605 = vpow2.f32 %v1464_v30  ;;  %v1404_v8 = vsub.f32 %v3143_v40, %v1328_v29  ;;  %v1405_v12 = vsub.f32 %v3149_v44, %v1328_v29  ;;  %v1406_v59 = vsub.f32 %v3146_v42, %v1328_v29  ;;  %v4266_v30 = vld [vmem:[#allocation13_spill] sm:$0xff] }
 0x354   : > { %2607 = vpow2.f32 %v1466_v31  ;;  %v1407_v32 = vsub.f32 %v3152_v46, %v1328_v29 }
 0x355   : > { %2609 = vpow2.f32 %v1468_v55  ;;  %v1472_v36 = vmul.f32 1.442695, %v1404_v8  ;;  %v1474_v34 = vmul.f32 1.442695, %v1405_v12  ;;  %v1476_v53 = vmul.f32 1.442695, %v1406_v59 }
 0x356   : > { %2611 = vpow2.f32 %v1470_v7  ;;  %v1478_v13 = vmul.f32 1.442695, %v1407_v32  ;;  %v1333_v41 = vpop.permute.xlu1 %1332  ;;  %v4267_v32 = vld [vmem:[#allocation14_spill] sm:$0xff] }
 0x357   : > { %2613 = vpow2.f32 %v1472_v36  ;;  %v1408_v47 = vsub.f32 %v4265_v18, %v1333_v41  ;;  %v1409_v16 = vsub.f32 %v4266_v30, %v1333_v41  ;;  %v1410_v40 = vsub.f32 %v3158_v50, %v1333_v41  ;;  %v4268_v36 = vld [vmem:[#allocation15_spill] sm:$0xff] }
 0x358   : > { %2615 = vpow2.f32 %v1474_v34  ;;  %v1411_v42 = vsub.f32 %v3164_v54, %v1333_v41 }
 0x359   : > { %2617 = vpow2.f32 %v1476_v53  ;;  %v1480_v31 = vmul.f32 1.442695, %v1408_v47  ;;  %v1482_v29 = vmul.f32 1.442695, %v1409_v16  ;;  %v1484_v55 = vmul.f32 1.442695, %v1410_v40 }
 0x35a   : > { %2619 = vpow2.f32 %v1478_v13  ;;  %v1486_v8 = vmul.f32 1.442695, %v1411_v42  ;;  %v1338_v59 = vpop.permute.xlu1 %1337 }
 0x35b   : > { %2621 = vpow2.f32 %v1480_v31  ;;  %v1412_v7 = vsub.f32 %v4267_v32, %v1338_v59  ;;  %v1413_v12 = vsub.f32 %v4268_v36, %v1338_v59  ;;  %v1414_v18 = vsub.f32 %v3170_v58, %v1338_v59 }
 0x35c   : > { %2623 = vpow2.f32 %v1482_v29  ;;  %v1415_v30 = vsub.f32 %v3176_v62, %v1338_v59 }
 0x35d   : > { %2625 = vpow2.f32 %v1484_v55  ;;  %v1488_v34 = vmul.f32 1.442695, %v1412_v7  ;;  %v1490_v41 = vmul.f32 1.442695, %v1413_v12  ;;  %v1492_v53 = vmul.f32 1.442695, %v1414_v18 }
 0x35e   : > { %2627 = vpow2.f32 %v1486_v8  ;;  %v1494_v47 = vmul.f32 1.442695, %v1415_v30  ;;  %v1343_v40 = vpop.permute.xlu1 %1342  ;;  %v1368_v13 = vpop.permute.xlu0 %1367 }
 0x35f   : > { %2629 = vpow2.f32 %v1488_v34  ;;  %v1416_v42 = vsub.f32 %v3179_v0, %v1343_v40  ;;  %v1417_v16 = vsub.f32 %v3185_v4, %v1343_v40  ;;  %v1418_v31 = vsub.f32 %v3182_v2, %v1343_v40 }
 0x360   : > { %v3566_v32 = vpop.eup %2605  ;;  %2631 = vpow2.f32 %v1490_v41  ;;  %v1419_v29 = vsub.f32 %v3188_v6, %v1343_v40  ;;  %v1436_v55 = vsub.f32 %v3239_v57, %v1368_v13  ;;  %v1437_v59 = vsub.f32 %v3245_v1, %v1368_v13  ;;  %v4269_v1 = vld [vmem:[#allocation20_spill] sm:$0xff] }
 0x361   : > { %v3571_v8 = vpop.eup %2607  ;;  %2633 = vpow2.f32 %v1492_v53  ;;  %v1496_v7 = vmul.f32 1.442695, %v1416_v42  ;;  %v1498_v36 = vmul.f32 1.442695, %v1417_v16  ;;  %v1500_v12 = vmul.f32 1.442695, %v1418_v31 }
 0x362   : > { %v3573_v18 = vpop.eup %2609  ;;  %2635 = vpow2.f32 %v1494_v47  ;;  %v1502_v30 = vmul.f32 1.442695, %v1419_v29  ;;  %v1438_v34 = vsub.f32 %v3242_v61, %v1368_v13  ;;  %v1439_v41 = vsub.f32 %v3248_v5, %v1368_v13  ;;  %v1348_v2 = vpop.permute.xlu1 %1347  ;;  %v4270_v42 = vld [vmem:[#allocation22_spill] sm:$0xff] }
 0x363   : > { %v3577_v40 = vpop.eup %2611  ;;  %2637 = vpow2.f32 %v1496_v7  ;;  %v1536_v57 = vmul.f32 1.442695, %v1436_v55  ;;  %v1420_v6 = vsub.f32 %v4269_v1, %v1348_v2  ;;  %v1538_v53 = vmul.f32 1.442695, %v1437_v59  ;;  %v1378_v31 = vpop.permute.xlu0 %1377 }
 0x364   : > { %v3580_v4 = vpop.eup %2613  ;;  %2639 = vpow2.f32 %v1498_v36  ;;  %v1421_v16 = vsub.f32 %v4270_v42, %v1348_v2  ;;  %v1540_v29 = vmul.f32 1.442695, %v1438_v34  ;;  %v1422_v13 = vsub.f32 %v3194_v10, %v1348_v2 }
 0x365   : > { %v3583_v47 = vpop.eup %2615  ;;  %2641 = vpow2.f32 %v1500_v12  ;;  %v1542_v7 = vmul.f32 1.442695, %v1439_v41  ;;  %v1423_v55 = vsub.f32 %v3200_v15, %v1348_v2  ;;  %v1504_v59 = vmul.f32 1.442695, %v1420_v6 }
 0x366   : > { %v3586_v5 = vpop.eup %2617  ;;  %2643 = vpow2.f32 %v1502_v30  ;;  %v1353_v1 = vpop.permute.xlu1 %1352  ;;  %v1444_v36 = vsub.f32 %v3263_v26, %v1378_v31  ;;  %v1506_v12 = vmul.f32 1.442695, %v1421_v16  ;;  %v1445_v34 = vsub.f32 %v3269_v43, %v1378_v31 }
 0x367   : > { %v3589_v61 = vpop.eup %2619  ;;  %2645 = vpow2.f32 %v1536_v57  ;;  %v1508_v30 = vmul.f32 1.442695, %v1422_v13  ;;  %v1446_v41 = vsub.f32 %v3266_v35, %v1378_v31  ;;  %v1510_v15 = vmul.f32 1.442695, %v1423_v55  ;;  %v1388_v13 = vpop.permute.xlu0 %1387 }
 0x368   : > { %v3592_v42 = vpop.eup %2621  ;;  %2647 = vpow2.f32 %v1538_v53  ;;  %v1447_v6 = vsub.f32 %v4229_v52, %v1378_v31  ;;  %v1552_v26 = vmul.f32 1.442695, %v1444_v36  ;;  %v1424_v53 = vsub.f32 %v3203_v17, %v1353_v1 }
 0x369   : > { %v3595_v0 = vpop.eup %2623  ;;  %2649 = vpow2.f32 %v1540_v29  ;;  %v1554_v43 = vmul.f32 1.442695, %v1445_v34  ;;  %v1425_v29 = vsub.f32 %v3209_v21, %v1353_v1  ;;  %v1426_v52 = vsub.f32 %v3206_v19, %v1353_v1 }
 0x36a   : > { %v3598_v2 = vpop.eup %2625  ;;  %2651 = vpow2.f32 %v1542_v7  ;;  %v3607_v35 = vpop.permute.xlu1 %1357  ;;  %v1556_v7 = vmul.f32 1.442695, %v1446_v41  ;;  %v1558_v55 = vmul.f32 1.442695, %v1447_v6  ;;  %v1592_v36 = vadd.f32 %v3571_v8, %v3566_v32 }
 0x36b   : > { %v3601_v57 = vpop.eup %2627  ;;  %2653 = vpow2.f32 %v1504_v59  ;;  %v1427_v59 = vsub.f32 %v3212_v23, %v1353_v1  ;;  %v1512_v34 = vmul.f32 1.442695, %v1424_v53  ;;  %v1452_v21 = vsub.f32 %v3287_v11, %v1388_v13 }
 0x36c   : > { %v3604_v16 = vpop.eup %2629  ;;  %2655 = vpow2.f32 %v1506_v12  ;;  %v1453_v41 = vsub.f32 %v3293_v63, %v1388_v13  ;;  %v1516_v1 = vmul.f32 1.442695, %v1426_v52  ;;  %v1454_v32 = vsub.f32 %v4227_v60, %v1388_v13 }
 0x36d   : > { %v3609_v10 = vpop.eup %2631  ;;  %2657 = vpow2.f32 %v1508_v30  ;;  %v1514_v30 = vmul.f32 1.442695, %v1425_v29  ;;  %v1455_v8 = vsub.f32 %v4232_v48, %v1388_v13  ;;  %v1518_v53 = vmul.f32 1.442695, %v1427_v59  ;;  %v1398_v13 = vpop.permute.xlu0 %1397 }
 0x36e   : > { %v3612_v31 = vpop.eup %2633  ;;  %2659 = vpow2.f32 %v1510_v15  ;;  %v1593_v15 = vadd.f32 %v3573_v18, %v1592_v36  ;;  %v3633_v29 = vpop.permute.xlu1 %1362  ;;  %v1429_v60 = vsub.f32 %v3221_v33, %v3607_v35  ;;  %v1570_v48 = vmul.f32 1.442695, %v1453_v41 }
 0x36f   : > { %v3617_v12 = vpop.eup %2635  ;;  %2661 = vpow2.f32 %v1552_v26  ;;  %v1572_v59 = vmul.f32 1.442695, %v1454_v32  ;;  %v1574_v36 = vmul.f32 1.442695, %v1455_v8  ;;  %v1461_v8 = vsub.f32 %v3317_v20, %v1398_v13 }
 0x370   : > { %v3620_v17 = vpop.eup %2637  ;;  %2663 = vpow2.f32 %v1554_v43  ;;  %v1594_v11 = vadd.f32 %v3577_v40, %v1593_v15  ;;  %v1428_v43 = vsub.f32 %v3215_v25, %v3607_v35  ;;  %v1597_v40 = vadd.f32 %v3583_v47, %v3580_v4 }
 0x371   : > { %v3624_v6 = vpop.eup %2639  ;;  %2665 = vpow2.f32 %v1556_v7  ;;  %v1568_v7 = vmul.f32 1.442695, %v1452_v21  ;;  %v1430_v21 = vsub.f32 %v3218_v27, %v3607_v35  ;;  %v1522_v4 = vmul.f32 1.442695, %v1429_v60 }
 0x372   : > { %v3628_v26 = vpop.eup %2641  ;;  %2667 = vpow2.f32 %v1558_v55  ;;  %1595 = vadd.xlane.f32.xlu1 %v1594_v11  ;;  %v1520_v41 = vmul.f32 1.442695, %v1428_v43  ;;  %v1598_v11 = vadd.f32 %v3586_v5, %v1597_v40  ;;  %v1460_v47 = vsub.f32 %v3311_v3, %v1398_v13  ;;  %v3660_v43 = vpop.permute.xlu1 %1372 }
 0x373   : > { %v3635_v18 = vpop.eup %2643  ;;  %2669 = vpow2.f32 %v1512_v34  ;;  %v1524_v40 = vmul.f32 1.442695, %v1430_v21 }
 0x374   : > { %v3639_v52 = vpop.eup %2645  ;;  %2671 = vpow2.f32 %v1514_v30  ;;  %v1431_v30 = vsub.f32 %v3224_v37, %v3607_v35  ;;  %v1599_v35 = vadd.f32 %v3589_v61, %v1598_v11 }
 0x375   : > { %v3643_v55 = vpop.eup %2647  ;;  %2673 = vpow2.f32 %v1516_v1  ;;  %v1602_v1 = vadd.f32 %v3595_v0, %v3592_v42  ;;  %v4271_v42 = vld [vmem:[#allocation26_spill] sm:$0xff] }
 0x376   : > { %v3647_v34 = vpop.eup %2649  ;;  %2675 = vpow2.f32 %v1518_v53  ;;  %v1462_v53 = vsub.f32 %v3314_v22, %v1398_v13  ;;  %v1526_v0 = vmul.f32 1.442695, %v1431_v30  ;;  %1600 = vadd.xlane.f32.xlu0 %v1599_v35  ;;  %v1584_v22 = vmul.f32 1.442695, %v1460_v47 }
 0x377   : > { %v3652_v15 = vpop.eup %2651  ;;  %2677 = vpow2.f32 %v1568_v7  ;;  %v1463_v7 = vsub.f32 %v3320_v51, %v1398_v13  ;;  %v1603_v60 = vadd.f32 %v3598_v2, %v1602_v1  ;;  %v1586_v13 = vmul.f32 1.442695, %v1461_v8  ;;  %v1383_v8 = vpop.permute.xlu1 %1382 }
 0x378   : > { %v2654_v32 = vpop.eup %2653  ;;  %2679 = vpow2.f32 %v1570_v48  ;;  %v1432_v48 = vsub.f32 %v4271_v42, %v3633_v29  ;;  %v1588_v2 = vmul.f32 1.442695, %v1462_v53  ;;  %v1612_v53 = vadd.f32 %v3624_v6, %v3620_v17  ;;  %v4277_v17 = vld [vmem:[#allocation35_spill] sm:$0xff] }
 0x379   : > { %v2656_v5 = vpop.eup %2655  ;;  %2681 = vpow2.f32 %v1572_v59  ;;  %v1604_v61 = vadd.f32 %v3601_v57, %v1603_v60  ;;  %v1607_v59 = vadd.f32 %v3609_v10, %v3604_v16  ;;  %v1590_v1 = vmul.f32 1.442695, %v1463_v7  ;;  %v4274_v10 = vld [vmem:[#allocation29_spill] sm:$0xff] }
 0x37a   : > { %v2658_v3 = vpop.eup %2657  ;;  %2683 = vpow2.f32 %v1574_v36  ;;  %v4272_v36 = vld [vmem:[#allocation28_spill] sm:$0xff]  ;;  %v1435_v16 = vsub.f32 %v4274_v10, %v3633_v29  ;;  %v1442_v6 = vsub.f32 %v4277_v17, %v3660_v43 }
 0x37b   : > { %v2660_v20 = vpop.eup %2659  ;;  %2685 = vpow2.f32 %v1520_v41  ;;  %v1433_v30 = vsub.f32 %v4272_v36, %v3633_v29  ;;  %v4273_v41 = vld [vmem:[#allocation27_spill] sm:$0xff]  ;;  %v1608_v57 = vadd.f32 %v3612_v31, %v1607_v59  ;;  %1605 = vadd.xlane.f32.xlu0 %v1604_v61  ;;  %v4276_v31 = vld [vmem:[#allocation36_spill] sm:$0xff]  ;;  %v1393_v17 = vpop.permute.xlu1 %1392 }
 0x37c   : > { %v3669_v21 = vpop.eup %2661  ;;  %2687 = vpow2.f32 %v1522_v4  ;;  %v1434_v47 = vsub.f32 %v4273_v41, %v3633_v29  ;;  %v1528_v4 = vmul.f32 1.442695, %v1432_v48  ;;  %v1441_v42 = vsub.f32 %v4276_v31, %v3660_v43 }
 0x37d   : > { %v3673_v11 = vpop.eup %2663  ;;  %2689 = vpow2.f32 %v1524_v40  ;;  %v4275_v40 = vld [vmem:[#allocation34_spill] sm:$0xff]  ;;  %v1530_v29 = vmul.f32 1.442695, %v1433_v30  ;;  %v1613_v48 = vadd.f32 %v3628_v26, %v1612_v53  ;;  %v1534_v10 = vmul.f32 1.442695, %v1435_v16 }
 0x37e   : > { %v3678_v35 = vpop.eup %2665  ;;  %2691 = vpow2.f32 %v1526_v0  ;;  %v1440_v7 = vsub.f32 %v4275_v40, %v3660_v43  ;;  %v1609_v0 = vadd.f32 %v3617_v12, %v1608_v57  ;;  %v1532_v36 = vmul.f32 1.442695, %v1434_v47  ;;  %v4278_v53 = vld [vmem:[#allocation42_spill] sm:$0xff]  ;;  %v4279_v40 = vld [vmem:[#allocation44_spill] sm:$0xff] }
 0x37f   : > { %v3684_v60 = vpop.eup %2667  ;;  %2693 = vpow2.f32 %v1584_v22  ;;  %v1443_v22 = vsub.f32 %v4230_v56, %v3660_v43  ;;  %v1614_v12 = vadd.f32 %v3635_v18, %v1613_v48  ;;  %v1617_v57 = vadd.f32 %v2656_v5, %v2654_v32 }
 0x380   : > { %v2670_v59 = vpop.eup %2669  ;;  %2695 = vpow2.f32 %v1586_v13  ;;  %1610 = vadd.xlane.f32.xlu1 %v1609_v0  ;;  %v1544_v30 = vmul.f32 1.442695, %v1440_v7  ;;  %v1546_v26 = vmul.f32 1.442695, %v1441_v42  ;;  %v1449_v31 = vsub.f32 %v4279_v40, %v1383_v8 }
 0x381   : > { %v2672_v61 = vpop.eup %2671  ;;  %2697 = vpow2.f32 %v1588_v2  ;;  %v1448_v2 = vsub.f32 %v4278_v53, %v1383_v8  ;;  %1615 = vadd.xlane.f32.xlu0 %v1614_v12  ;;  %v1618_v56 = vadd.f32 %v2658_v3, %v1617_v57  ;;  %v1550_v16 = vmul.f32 1.442695, %v1443_v22  ;;  %v4280_v57 = vld [vmem:[#allocation51_spill] sm:$0xff] }
 0x382   : > { %v2674_v41 = vpop.eup %2673  ;;  %2699 = vpow2.f32 %v1590_v1  ;;  %v1622_v43 = vadd.f32 %v2672_v61, %v2670_v59  ;;  %v1548_v1 = vmul.f32 1.442695, %v1442_v6  ;;  %v1450_v18 = vsub.f32 %v4231_v24, %v1383_v8 }
 0x383   : > { %v2676_v13 = vpop.eup %2675  ;;  %2701 = vpow2.f32 %v1528_v4  ;;  %v1451_v5 = vsub.f32 %v4233_v28, %v1383_v8  ;;  %v1619_v4 = vadd.f32 %v2660_v20, %v1618_v56  ;;  %v1456_v48 = vsub.f32 %v4228_v9, %v1393_v17 }
 0x384   : > { %v2678_v47 = vpop.eup %2677  ;;  %2703 = vpow2.f32 %v1530_v29  ;;  %v1623_v7 = vadd.f32 %v2674_v41, %v1622_v43  ;;  %v1560_v29 = vmul.f32 1.442695, %v1448_v2  ;;  %v1562_v59 = vmul.f32 1.442695, %v1449_v31 }
 0x385   : > { %v2680_v0 = vpop.eup %2679  ;;  %2705 = vpow2.f32 %v1532_v36  ;;  %v1457_v61 = vsub.f32 %v3305_v39, %v1393_v17  ;;  %1620 = vadd.xlane.f32.xlu1 %v1619_v4  ;;  %v1564_v6 = vmul.f32 1.442695, %v1450_v18  ;;  %v1458_v28 = vsub.f32 %v4234_v49, %v1393_v17 }
 0x386   : > { %v2682_v32 = vpop.eup %2681  ;;  %2707 = vpow2.f32 %v1534_v10  ;;  %v1624_v36 = vadd.f32 %v2676_v13, %v1623_v7  ;;  %v1566_v8 = vmul.f32 1.442695, %v1451_v5  ;;  %v1637_v9 = vadd.f32 %v3643_v55, %v3639_v52 }
 0x387   : > { %v3701_v42 = vpop.eup %2683  ;;  %2709 = vpow2.f32 %v1544_v30  ;;  %v1576_v10 = vmul.f32 1.442695, %v1456_v48  ;;  %v1459_v13 = vsub.f32 %v4280_v57, %v1393_v17  ;;  %v1578_v30 = vmul.f32 1.442695, %v1457_v61 }
 0x388   : > { %v2686_v3 = vpop.eup %2685  ;;  %2711 = vpow2.f32 %v1546_v26  ;;  %1625 = vadd.xlane.f32.xlu0 %v1624_v36  ;;  %v1580_v49 = vmul.f32 1.442695, %v1458_v28  ;;  %v1638_v31 = vadd.f32 %v3647_v34, %v1637_v9  ;;  %v1647_v52 = vadd.f32 %v3673_v11, %v3669_v21 }
 0x389   : > { %v2688_v24 = vpop.eup %2687  ;;  %2713 = vpow2.f32 %v1548_v1  ;;  %v1582_v43 = vmul.f32 1.442695, %v1459_v13  ;;  %v1657_v1 = vadd.f32 %v2680_v0, %v2678_v47 }
 0x38a   : > { %v2690_v20 = vpop.eup %2689  ;;  %2715 = vpow2.f32 %v1550_v16  ;;  %v1627_v22 = vadd.f32 %v2688_v24, %v2686_v3  ;;  %v1639_v5 = vadd.f32 %v3652_v15, %v1638_v31  ;;  %v1648_v4 = vadd.f32 %v3678_v35, %v1647_v52  ;;  %v4285_v31 = vld [vmem:[#allocation62_spill] sm:$0xff] }
 0x38b   : > { %v2692_v41 = vpop.eup %2691  ;;  %2717 = vpow2.f32 %v1560_v29  ;;  %v1658_v11 = vadd.f32 %v2682_v32, %v1657_v1 }
 0x38c   : > { %v2694_v12 = vpop.eup %2693  ;;  %2719 = vpow2.f32 %v1562_v59  ;;  %v1628_v26 = vadd.f32 %v2690_v20, %v1627_v22  ;;  %v1649_v61 = vadd.f32 %v3684_v60, %v1648_v4 }
 0x38d   : > { %v2696_v53 = vpop.eup %2695  ;;  %2721 = vpow2.f32 %v1564_v6  ;;  %v1659_v20 = vadd.f32 %v3701_v42, %v1658_v11 }
 0x38e   : > { %v2698_v2 = vpop.eup %2697  ;;  %2723 = vpow2.f32 %v1566_v8  ;;  %v1629_v40 = vadd.f32 %v2692_v41, %v1628_v26  ;;  %v1667_v47 = vadd.f32 %v2696_v53, %v2694_v12  ;;  %v4281_v53 = vld [vmem:[#allocation56_spill] sm:$0xff] }
 0x38f   : > { %v2700_v55 = vpop.eup %2699  ;;  %2725 = vpow2.f32 %v1576_v10 }
 0x390   : > { %v2702_v56 = vpop.eup %2701  ;;  %2727 = vpow2.f32 %v1578_v30  ;;  %1630 = vadd.xlane.f32.xlu1 %v1629_v40  ;;  %v1668_v8 = vadd.f32 %v2698_v2, %v1667_v47  ;;  %v4284_v40 = vld [vmem:[#allocation60_spill] sm:$0xff] }
 0x391   : > { %v2704_v17 = vpop.eup %2703  ;;  %2729 = vpow2.f32 %v1580_v49  ;;  %v4282_v49 = vld [vmem:[#allocation58_spill] sm:$0xff]  ;;  %v4286_v52 = vsub.f32 %v4284_v40, %v4285_v31  ;;  %v1244_v31 = vld [vmem:[#allocation4 + $0x20] sm:$0xff] }
 0x392   : > { %v2706_v16 = vpop.eup %2705  ;;  %v1632_v18 = vadd.f32 %v2704_v17, %v2702_v56  ;;  %2731 = vpow2.f32 %v1582_v43  ;;  %v1669_v12 = vadd.f32 %v2700_v55, %v1668_v8  ;;  %v4283_v42 = vsub.f32 %v4281_v53, %v4282_v49  ;;  %v4287_v43 = vld [vmem:[#allocation55_spill] sm:$0xff]  ;;  %v4288_v17 = vld [vmem:[#allocation57_spill] sm:$0xff] }
 0x393   : > { %v2708_v7 = vpop.eup %2707  ;;  %v1274_v56 = vmul.f32 1.442695, %v4286_v52  ;;  %v4289_v1 = vsub.f32 %v4287_v43, %v4288_v17  ;;  %v4307_v43 = vld [vmem:[#allocation72_spill] sm:$0xff] }
 0x394   : > { %v2710_v34 = vpop.eup %2709  ;;  %v1633_v29 = vadd.f32 %v2706_v16, %v1632_v18  ;;  %1640 = vadd.xlane.f32.xlu1 %v1639_v5  ;;  %v1272_v2 = vmul.f32 1.442695, %v4283_v42  ;;  %v4290_v16 = vld [vmem:[#allocation59_spill] sm:$0xff]  ;;  %v4291_v18 = vld [vmem:[#allocation61_spill] sm:$0xff] }
 0x395   : > { %v2712_v21 = vpop.eup %2711  ;;  %v1276_v55 = vmul.f32 1.442695, %v4289_v1  ;;  %v4292_v5 = vsub.f32 %v4290_v16, %v4291_v18  ;;  %v4309_v16 = vld [vmem:[#allocation73_spill] sm:$0xff]  ;;  %v4310_v18 = vld [vmem:[#allocation75_spill] sm:$0xff] }
 0x396   : > { %v2714_v48 = vpop.eup %2713  ;;  %v1634_v3 = vadd.f32 %v2708_v7, %v1633_v29  ;;  %v1642_v59 = vadd.f32 %v2712_v21, %v2710_v34  ;;  %2733 = vpow2.f32 %v1272_v2  ;;  %v4293_v7 = vld [vmem:[#allocation64_spill] sm:$0xff]  ;;  %v4294_v34 = vld [vmem:[#allocation65_spill] sm:$0xff] }
 0x397   : > { %v2716_v0 = vpop.eup %2715  ;;  %2735 = vpow2.f32 %v1274_v56  ;;  %v1278_v4 = vmul.f32 1.442695, %v4292_v5  ;;  %v4295_v29 = vsub.f32 %v4293_v7, %v4294_v34  ;;  %v4306_v56 = vld [vmem:[#allocation70_spill] sm:$0xff]  ;;  %v4311_v5 = vsub.f32 %v4309_v16, %v4310_v18  ;;  %v1248_v16 = vld [vmem:[#allocation4 + $0x40] sm:$0xff] }
 0x398   : > { %v2718_v36 = vpop.eup %2717  ;;  %1635 = vadd.xlane.f32.xlu0 %v1634_v3  ;;  %v1643_v24 = vadd.f32 %v2714_v48, %v1642_v59  ;;  %1650 = vadd.xlane.f32.xlu1 %v1649_v61  ;;  %2737 = vpow2.f32 %v1276_v55  ;;  %v1240_v48 = vld [vmem:[#allocation4] sm:$0xff]  ;;  %v4308_v17 = vsub.f32 %v4306_v56, %v4307_v43  ;;  %v1251_v18 = vld [vmem:[#allocation4 + $0x58] sm:$0xff] }
 0x399   : > { %v2720_v15 = vpop.eup %2719  ;;  %v1280_v21 = vmul.f32 1.442695, %v4295_v29  ;;  %2739 = vpow2.f32 %v1278_v4  ;;  %v4296_v3 = vld [vmem:[#allocation63_spill] sm:$0xff]  ;;  %v1294_v4 = vmul.f32 1.442695, %v4311_v5 }
 0x39a   : > { %v2722_v35 = vpop.eup %2721  ;;  %v1644_v6 = vadd.f32 %v2716_v0, %v1643_v24  ;;  %v1652_v28 = vadd.f32 %v2720_v15, %v2718_v36  ;;  %v4297_v59 = vsub.f32 %v4296_v3, %v3430_v14  ;;  %v4298_v36 = vld [vmem:[#allocation67_spill] sm:$0xff]  ;;  %v4300_v14 = vld [vmem:[#allocation66_spill] sm:$0xff]  ;;  %v1288_v1 = vmul.f32 1.442695, %v4308_v17 }
 0x39b   : > { %v2724_v22 = vpop.eup %2723  ;;  %2741 = vpow2.f32 %v1280_v21  ;;  %v4299_v24 = vsub.f32 %v4298_v36, %v3452_v45  ;;  %v1245_v21 = vld [vmem:[#allocation4 + $0x28] sm:$0xff]  ;;  %v4312_v3 = vld [vmem:[#allocation74_spill] sm:$0xff]  ;;  %v4315_v36 = vld [vmem:[#allocation77_spill] sm:$0xff] }
 0x39c   : > { %v2726_v32 = vpop.eup %2725  ;;  %1645 = vadd.xlane.f32.xlu0 %v1644_v6  ;;  %v1653_v9 = vadd.f32 %v2722_v35, %v1652_v28  ;;  %1660 = vadd.xlane.f32.xlu1 %v1659_v20  ;;  %v1282_v61 = vmul.f32 1.442695, %v4297_v59  ;;  %v1241_v28 = vld [vmem:[#allocation4 + $0x8] sm:$0xff] }
 0x39d   : > { %v2728_v41 = vpop.eup %2727  ;;  %v1284_v15 = vmul.f32 1.442695, %v4299_v24  ;;  %v4313_v59 = vld [vmem:[#allocation76_spill] sm:$0xff]  ;;  %v4316_v24 = vld [vmem:[#allocation79_spill] sm:$0xff] }
 0x39e   : > { %v1654_v60 = vadd.f32 %v2724_v22, %v1653_v9  ;;  %v1662_v10 = vadd.f32 %v2728_v41, %v2726_v32  ;;  %v2730_v57 = vpop.eup %2729  ;;  %2743 = vpow2.f32 %v1282_v61  ;;  %v1242_v32 = vld [vmem:[#allocation4 + $0x10] sm:$0xff]  ;;  %v4301_v9 = vld [vmem:[#allocation68_spill] sm:$0xff]  ;;  %v4314_v61 = vsub.f32 %v4312_v3, %v4313_v59 }
 0x39f   : > { %v2732_v30 = vpop.eup %2731  ;;  %2745 = vpow2.f32 %v1284_v15  ;;  %v4302_v41 = vsub.f32 %v4300_v14, %v4301_v9  ;;  %v4317_v15 = vsub.f32 %v4315_v36, %v4316_v24  ;;  %v1253_v3 = vld [vmem:[#allocation4 + $0x68] sm:$0xff] }
 0x3a0   : > { %1655 = vadd.xlane.f32.xlu0 %v1654_v60  ;;  %v1663_v13 = vadd.f32 %v2730_v57, %v1662_v10  ;;  %1670 = vadd.xlane.f32.xlu1 %v1669_v12  ;;  %v1243_v57 = vld [vmem:[#allocation4 + $0x18] sm:$0xff] }
 0x3a1   : > { %v1286_v60 = vmul.f32 1.442695, %v4302_v41 }
 0x3a2   : > { %v1664_v26 = vadd.f32 %v2732_v30, %v1663_v13  ;;  %v4303_v30 = vld [vmem:[#allocation69_spill] sm:$0xff] }
 0x3a3   : > { %v2734_v11 = vpop.eup %2733  ;;  %2747 = vpow2.f32 %v1286_v60  ;;  %v4321_v60 = vld [vmem:[#allocation81_spill] sm:$0xff] }
 0x3a4   : > { %1665 = vadd.xlane.f32.xlu0 %v1664_v26  ;;  %v1304_v47 = vmul.f32 %v2734_v11, %v1240_v48  ;;  %v2736_v6 = vpop.eup %2735  ;;  %v4304_v26 = vld [vmem:[#allocation71_spill] sm:$0xff] }
 0x3a5   : > { %v1305_v20 = vmul.f32 %v2736_v6, %v1241_v28  ;;  %v2738_v8 = vpop.eup %2737  ;;  %v4305_v53 = vsub.f32 %v4303_v30, %v4304_v26  ;;  %v1247_v30 = vld [vmem:[#allocation4 + $0x38] sm:$0xff] }
 0x3a6   : > { %v2740_v12 = vpop.eup %2739  ;;  %v1306_v45 = vmul.f32 %v2738_v8, %v1242_v32  ;;  %v4319_v32 = vld [vmem:[#allocation80_spill] sm:$0xff]  ;;  %v4324_v26 = vld [vmem:[#allocation82_spill] sm:$0xff] }
 0x3a7   : > { %v1290_v49 = vmul.f32 1.442695, %v4305_v53  ;;  %v1307_v40 = vmul.f32 %v2740_v12, %v1243_v57  ;;  %v4325_v53 = vld [vmem:[#allocation84_spill] sm:$0xff] }
 0x3a8   : > { %v2742_v2 = vpop.eup %2741 }
 0x3a9   : > { %2749 = vpow2.f32 %v1290_v49  ;;  %v1308_v7 = vmul.f32 %v2742_v2, %v1244_v31  ;;  %v4326_v49 = vsub.f32 %v4324_v26, %v4325_v53 }
 0x3aa   : > { %2751 = vpow2.f32 %v1288_v1 }
 0x3ab   : > { %v2744_v34 = vpop.eup %2743  ;;  %2753 = vpow2.f32 %v1294_v4 }
 0x3ac   : > { %v2746_v48 = vpop.eup %2745  ;;  %v1309_v6 = vmul.f32 %v2744_v34, %v1245_v21 }
 0x3fb   : > { %v1596_v0 = vpop.xlane.xlu1 %1595 }
 0x3fc   : > { %v1672_v35 = vadd.f32 %v1596_v0, %v1304_v47  ;;  %v1292_v47 = vmul.f32 1.442695, %v4314_v61  ;;  %v1246_v0 = vld [vmem:[#allocation4 + $0x30] sm:$0xff] }
 0x3fd   : > { %v1310_v8 = vmul.f32 %v2746_v48, %v1246_v0  ;;  %v1250_v48 = vld [vmem:[#allocation4 + $0x50] sm:$0xff] }
 0x3fe   : > { %1689 = vst.msk [vmem:[#allocation4] sm:$0xff] %vm1688_vm1, %v1672_v35  ;;  %v1298_v35 = vmul.f32 1.442695, %v4317_v15  ;;  %2755 = vpow2.f32 %v1292_v47 }
 0x3ff   : > { %v1601_v22 = vpop.xlane.xlu0 %1600 }
 0x400   : > { %v1673_v10 = vadd.f32 %v1601_v22, %v1305_v20  ;;  %v4318_v22 = vld [vmem:[#allocation78_spill] sm:$0xff]  ;;  %2757 = vpow2.f32 %v1298_v35 }
 0x401   : > { %v4320_v14 = vsub.f32 %v4318_v22, %v4319_v32 }
 0x402   : > { %1690 = vst.msk [vmem:[#allocation4 + $0x8] sm:$0xff] %vm1688_vm1, %v1673_v10  ;;  %v4322_v10 = vld [vmem:[#allocation83_spill] sm:$0xff] }
 0x403   : > { %v1296_v9 = vmul.f32 1.442695, %v4320_v14  ;;  %v4323_v12 = vsub.f32 %v4321_v60, %v4322_v10  ;;  %v1254_v60 = vld [vmem:[#allocation4 + $0x70] sm:$0xff] }
 0x404   : > { %v1606_v13 = vpop.xlane.xlu0 %1605 }
 0x405   : > { %v1674_v42 = vadd.f32 %v1606_v13, %v1306_v45  ;;  %v1302_v45 = vmul.f32 1.442695, %v4323_v12  ;;  %v2748_v13 = vpop.eup %2747  ;;  %2759 = vpow2.f32 %v1296_v9 }
 0x406   : > { %v1311_v2 = vmul.f32 %v2748_v13, %v1247_v30 }
 0x407   : > { %1691 = vst.msk [vmem:[#allocation4 + $0x10] sm:$0xff] %vm1688_vm1, %v1674_v42  ;;  %2761 = vpow2.f32 %v1302_v45  ;;  %v1300_v42 = vmul.f32 1.442695, %v4326_v49 }
 0x409   : > { %v1611_v52 = vpop.xlane.xlu1 %1610  ;;  %2763 = vpow2.f32 %v1300_v42 }
 0x40a   : > { %v1675_v55 = vadd.f32 %v1611_v52, %v1307_v40  ;;  %v1616_v29 = vpop.xlane.xlu0 %1615  ;;  %v2750_v40 = vpop.eup %2749  ;;  %v1249_v52 = vld [vmem:[#allocation4 + $0x48] sm:$0xff] }
 0x40b   : > { %v1676_v11 = vadd.f32 %v1616_v29, %v1308_v7  ;;  %v2752_v43 = vpop.eup %2751  ;;  %v1313_v17 = vmul.f32 %v2750_v40, %v1249_v52 }
 0x40c   : > { %1692 = vst.msk [vmem:[#allocation4 + $0x18] sm:$0xff] %vm1688_vm1, %v1675_v55  ;;  %v2754_v1 = vpop.eup %2753  ;;  %v1312_v7 = vmul.f32 %v2752_v43, %v1248_v16 }
 0x40d   : > { %1693 = vst.msk [vmem:[#allocation4 + $0x20] sm:$0xff] %vm1688_vm1, %v1676_v11  ;;  %v2756_v4 = vpop.eup %2755  ;;  %v1315_v34 = vmul.f32 %v2754_v1, %v1251_v18 }
 0x40e   : > { %v1621_v28 = vpop.xlane.xlu1 %1620  ;;  %v2758_v29 = vpop.eup %2757  ;;  %v1314_v0 = vmul.f32 %v2756_v4, %v1250_v48 }
 0x40f   : > { %v1677_v20 = vadd.f32 %v1621_v28, %v1309_v6  ;;  %v1317_v36 = vmul.f32 %v2758_v29, %v1253_v3  ;;  %v1252_v6 = vld [vmem:[#allocation4 + $0x60] sm:$0xff]  ;;  %v1255_v28 = vld [vmem:[#allocation4 + $0x78] sm:$0xff] }
 0x411   : > { %v1626_v41 = vpop.xlane.xlu0 %1625  ;;  %1694 = vst.msk [vmem:[#allocation4 + $0x28] sm:$0xff] %vm1688_vm1, %v1677_v20 }
 0x412   : > { %v1678_v57 = vadd.f32 %v1626_v41, %v1310_v8  ;;  %v2760_v47 = vpop.eup %2759 }
 0x413   : > { %v1316_v22 = vmul.f32 %v2760_v47, %v1252_v6 }
 0x414   : > { %1695 = vst.msk [vmem:[#allocation4 + $0x30] sm:$0xff] %vm1688_vm1, %v1678_v57  ;;  %v2762_v24 = vpop.eup %2761 }
 0x415   : > { %v1319_v32 = vmul.f32 %v2762_v24, %v1255_v28 }
 0x416   : > { %v2764_v14 = vpop.eup %2763 }
 0x417   : > { %v1318_v45 = vmul.f32 %v2764_v14, %v1254_v60 }
 0x419   : > { %v1631_v31 = vpop.xlane.xlu1 %1630 }
 0x41a   : > { %v1679_v56 = vadd.f32 %v1631_v31, %v1311_v2 }
 0x41c   : > { %1696 = vst.msk [vmem:[#allocation4 + $0x38] sm:$0xff] %vm1688_vm1, %v1679_v56 }
 0x41d   : > { %v1641_v55 = vpop.xlane.xlu1 %1640 }
 0x41e   : > { %v1681_v5 = vadd.f32 %v1641_v55, %v1313_v17 }
 0x420   : > { %1698 = vst.msk [vmem:[#allocation4 + $0x48] sm:$0xff] %vm1688_vm1, %v1681_v5 }
 0x421   : > { %v1636_v21 = vpop.xlane.xlu0 %1635  ;;  %v1651_v11 = vpop.xlane.xlu1 %1650 }
 0x422   : > { %v1680_v59 = vadd.f32 %v1636_v21, %v1312_v7  ;;  %v1683_v61 = vadd.f32 %v1651_v11, %v1315_v34 }
 0x424   : > { %1697 = vst.msk [vmem:[#allocation4 + $0x40] sm:$0xff] %vm1688_vm1, %v1680_v59  ;;  %1700 = vst.msk [vmem:[#allocation4 + $0x58] sm:$0xff] %vm1688_vm1, %v1683_v61 }
 0x425   : > { %v1646_v15 = vpop.xlane.xlu0 %1645  ;;  %v1661_v35 = vpop.xlane.xlu1 %1660 }
 0x426   : > { %v1682_v20 = vadd.f32 %v1646_v15, %v1314_v0  ;;  %v1685_v8 = vadd.f32 %v1661_v35, %v1317_v36 }
 0x428   : > { %1699 = vst.msk [vmem:[#allocation4 + $0x50] sm:$0xff] %vm1688_vm1, %v1682_v20  ;;  %1702 = vst.msk [vmem:[#allocation4 + $0x68] sm:$0xff] %vm1688_vm1, %v1685_v8 }
 0x429   : > { %v1656_v9 = vpop.xlane.xlu0 %1655  ;;  %v1671_v41 = vpop.xlane.xlu1 %1670 }
 0x42a   : > { %v1684_v10 = vadd.f32 %v1656_v9, %v1316_v22  ;;  %v1687_v12 = vadd.f32 %v1671_v41, %v1319_v32 }
 0x42c   : > { %1701 = vst.msk [vmem:[#allocation4 + $0x60] sm:$0xff] %vm1688_vm1, %v1684_v10  ;;  %1704 = vst.msk [vmem:[#allocation4 + $0x78] sm:$0xff] %vm1688_vm1, %v1687_v12 }
 0x42d   : > { %v1666_v57 = vpop.xlane.xlu0 %1665 }
 0x42e   : > { %v1686_v13 = vadd.f32 %v1666_v57, %v1318_v45 }
 0x430   : > { %1703 = vst.msk [vmem:[#allocation4 + $0x70] sm:$0xff] %vm1688_vm1, %v1686_v13 }
 0x431 PF: > { %p1721_p1 = scmp.eq.s32.totalorder %s2845_s20, 1 }
 0x433   : > { %p1722_p2 = pnand %p1721_p1, %p248_p11 }
 0x435   : > { %1725 = sbr.rel (%p1722_p2) target bundleno = 1117 (0x45d), region = 52 }
 0x43a   : > { %v1742_v30 = vld [vmem:[#allocation4] sm:$0xff]  ;;  %v1743_v26 = vld [vmem:[#allocation4 + $0x8] sm:$0xff]  ;;  %v1744_v53 = vld [vmem:[#allocation4 + $0x10] sm:$0xff]  ;;  %vm1806_vm2 = vcmask 7168  }
 0x43b   : > { %2765 = vlog2.f32 %v1742_v30  ;;  %v1745_v49 = vld [vmem:[#allocation4 + $0x18] sm:$0xff]  ;;  %v1746_v42 = vld [vmem:[#allocation4 + $0x20] sm:$0xff]  ;;  %v1747_v2 = vld [vmem:[#allocation4 + $0x28] sm:$0xff] }
 0x43c   : > { %2767 = vlog2.f32 %v1743_v26  ;;  %v1748_v40 = vld [vmem:[#allocation4 + $0x30] sm:$0xff]  ;;  %v1749_v31 = vld [vmem:[#allocation4 + $0x38] sm:$0xff]  ;;  %v1750_v52 = vld [vmem:[#allocation4 + $0x40] sm:$0xff] }
 0x43d   : > { %2769 = vlog2.f32 %v1744_v53  ;;  %v1751_v56 = vld [vmem:[#allocation4 + $0x48] sm:$0xff]  ;;  %v1752_v43 = vld [vmem:[#allocation4 + $0x50] sm:$0xff]  ;;  %v1753_v17 = vld [vmem:[#allocation4 + $0x58] sm:$0xff] }
 0x43e   : > { %2771 = vlog2.f32 %v1745_v49  ;;  %v1754_v1 = vld [vmem:[#allocation4 + $0x60] sm:$0xff]  ;;  %v1755_v55 = vld [vmem:[#allocation4 + $0x68] sm:$0xff]  ;;  %v1756_v16 = vld [vmem:[#allocation4 + $0x70] sm:$0xff] }
 0x43f   : > { %2773 = vlog2.f32 %v1746_v42  ;;  %v1757_v18 = vld [vmem:[#allocation4 + $0x78] sm:$0xff]  ;;  %v1726_v4 = vld [vmem:[#allocation3] sm:$0xff]  ;;  %v1727_v29 = vld [vmem:[#allocation3 + $0x8] sm:$0xff] }
 0x440   : > { %2775 = vlog2.f32 %v1747_v2  ;;  %v1728_v48 = vld [vmem:[#allocation3 + $0x10] sm:$0xff]  ;;  %v1729_v47 = vld [vmem:[#allocation3 + $0x18] sm:$0xff]  ;;  %v1730_v15 = vld [vmem:[#allocation3 + $0x20] sm:$0xff] }
 0x441   : > { %2777 = vlog2.f32 %v1748_v40  ;;  %v1731_v20 = vld [vmem:[#allocation3 + $0x28] sm:$0xff]  ;;  %v1732_v14 = vld [vmem:[#allocation3 + $0x30] sm:$0xff]  ;;  %v1733_v10 = vld [vmem:[#allocation3 + $0x38] sm:$0xff] }
 0x442   : > { %2779 = vlog2.f32 %v1749_v31  ;;  %v1734_v13 = vld [vmem:[#allocation3 + $0x40] sm:$0xff]  ;;  %v1735_v49 = vld [vmem:[#allocation3 + $0x48] sm:$0xff]  ;;  %v1736_v31 = vld [vmem:[#allocation3 + $0x50] sm:$0xff] }
 0x443   : > { %2781 = vlog2.f32 %v1750_v52 }
 0x444   : > { %2783 = vlog2.f32 %v1751_v56 }
 0x445   : > { %2785 = vlog2.f32 %v1752_v43 }
 0x446   : > { %2787 = vlog2.f32 %v1753_v17  ;;  %v1737_v17 = vld [vmem:[#allocation3 + $0x58] sm:$0xff] }
 0x447   : > { %2789 = vlog2.f32 %v1754_v1 }
 0x448   : > { %v2766_v5 = vpop.eup %2765  ;;  %2791 = vlog2.f32 %v1755_v55 }
 0x449   : > { %v2768_v7 = vpop.eup %2767  ;;  %v1759_v34 = vmul.f32 0.6931472, %v2766_v5  ;;  %2793 = vlog2.f32 %v1756_v16 }
 0x44a   : > { %v2770_v21 = vpop.eup %2769  ;;  %v1761_v11 = vmul.f32 0.6931472, %v2768_v7  ;;  %2795 = vlog2.f32 %v1757_v18  ;;  %v1738_v18 = vld [vmem:[#allocation3 + $0x60] sm:$0xff] }
 0x44b   : > { %v2772_v3 = vpop.eup %2771  ;;  %v1790_v59 = vadd.f32 %v1759_v34, %v1726_v4  ;;  %v1763_v61 = vmul.f32 0.6931472, %v2770_v21  ;;  %v1739_v34 = vld [vmem:[#allocation3 + $0x68] sm:$0xff] }
 0x44c   : > { %v2774_v0 = vpop.eup %2773  ;;  %v1791_v36 = vadd.f32 %v1761_v11, %v1727_v29  ;;  %v1765_v24 = vmul.f32 0.6931472, %v2772_v3 }
 0x44d   : > { %v2776_v35 = vpop.eup %2775  ;;  %1807 = vst.msk [vmem:[#allocation5] sm:$0xff] %vm1806_vm2, %v1790_v59  ;;  %v1792_v6 = vadd.f32 %v1763_v61, %v1728_v48  ;;  %v1767_v28 = vmul.f32 0.6931472, %v2774_v0  ;;  %v1740_v48 = vld [vmem:[#allocation3 + $0x70] sm:$0xff] }
 0x44e   : > { %v2778_v8 = vpop.eup %2777  ;;  %1808 = vst.msk [vmem:[#allocation5 + $0x8] sm:$0xff] %vm1806_vm2, %v1791_v36  ;;  %v1793_v22 = vadd.f32 %v1765_v24, %v1729_v47  ;;  %v1769_v32 = vmul.f32 0.6931472, %v2776_v35  ;;  %v1741_v47 = vld [vmem:[#allocation3 + $0x78] sm:$0xff] }
 0x44f   : > { %v2780_v9 = vpop.eup %2779  ;;  %1809 = vst.msk [vmem:[#allocation5 + $0x10] sm:$0xff] %vm1806_vm2, %v1792_v6  ;;  %v1794_v41 = vadd.f32 %v1767_v28, %v1730_v15  ;;  %v1771_v60 = vmul.f32 0.6931472, %v2778_v8 }
 0x450   : > { %v2782_v12 = vpop.eup %2781  ;;  %1810 = vst.msk [vmem:[#allocation5 + $0x18] sm:$0xff] %vm1806_vm2, %v1793_v22  ;;  %v1795_v45 = vadd.f32 %v1769_v32, %v1731_v20  ;;  %v1773_v57 = vmul.f32 0.6931472, %v2780_v9 }
 0x451   : > { %v2784_v30 = vpop.eup %2783  ;;  %1811 = vst.msk [vmem:[#allocation5 + $0x20] sm:$0xff] %vm1806_vm2, %v1794_v41  ;;  %v1796_v26 = vadd.f32 %v1771_v60, %v1732_v14  ;;  %v1775_v53 = vmul.f32 0.6931472, %v2782_v12 }
 0x452   : > { %v2786_v42 = vpop.eup %2785  ;;  %1812 = vst.msk [vmem:[#allocation5 + $0x28] sm:$0xff] %vm1806_vm2, %v1795_v45  ;;  %v1797_v2 = vadd.f32 %v1773_v57, %v1733_v10  ;;  %v1777_v40 = vmul.f32 0.6931472, %v2784_v30 }
 0x453   : > { %v2788_v52 = vpop.eup %2787  ;;  %1813 = vst.msk [vmem:[#allocation5 + $0x30] sm:$0xff] %vm1806_vm2, %v1796_v26  ;;  %v1798_v56 = vadd.f32 %v1775_v53, %v1734_v13  ;;  %v1779_v43 = vmul.f32 0.6931472, %v2786_v42 }
 0x454   : > { %v2790_v1 = vpop.eup %2789  ;;  %1814 = vst.msk [vmem:[#allocation5 + $0x38] sm:$0xff] %vm1806_vm2, %v1797_v2  ;;  %v1799_v55 = vadd.f32 %v1777_v40, %v1735_v49  ;;  %v1781_v16 = vmul.f32 0.6931472, %v2788_v52 }
 0x455   : > { %v2792_v5 = vpop.eup %2791  ;;  %1815 = vst.msk [vmem:[#allocation5 + $0x40] sm:$0xff] %vm1806_vm2, %v1798_v56  ;;  %v1800_v4 = vadd.f32 %v1779_v43, %v1736_v31  ;;  %v1783_v7 = vmul.f32 0.6931472, %v2790_v1 }
 0x456   : > { %v2794_v29 = vpop.eup %2793  ;;  %1816 = vst.msk [vmem:[#allocation5 + $0x48] sm:$0xff] %vm1806_vm2, %v1799_v55  ;;  %v1801_v21 = vadd.f32 %v1781_v16, %v1737_v17  ;;  %v1785_v11 = vmul.f32 0.6931472, %v2792_v5 }
 0x457   : > { %v2796_v3 = vpop.eup %2795  ;;  %1817 = vst.msk [vmem:[#allocation5 + $0x50] sm:$0xff] %vm1806_vm2, %v1800_v4  ;;  %v1802_v59 = vadd.f32 %v1783_v7, %v1738_v18  ;;  %v1787_v61 = vmul.f32 0.6931472, %v2794_v29 }
 0x458   : > { %1818 = vst.msk [vmem:[#allocation5 + $0x58] sm:$0xff] %vm1806_vm2, %v1801_v21  ;;  %v1803_v0 = vadd.f32 %v1785_v11, %v1739_v34  ;;  %v1789_v36 = vmul.f32 0.6931472, %v2796_v3 }
 0x459   : > { %1819 = vst.msk [vmem:[#allocation5 + $0x60] sm:$0xff] %vm1806_vm2, %v1802_v59  ;;  %v1804_v24 = vadd.f32 %v1787_v61, %v1740_v48 }
 0x45a   : > { %1820 = vst.msk [vmem:[#allocation5 + $0x68] sm:$0xff] %vm1806_vm2, %v1803_v0  ;;  %v1805_v15 = vadd.f32 %v1789_v36, %v1741_v47 }
 0x45b   : > { %1821 = vst.msk [vmem:[#allocation5 + $0x70] sm:$0xff] %vm1806_vm2, %v1804_v24 }
 0x45c   : > { %1822 = vst.msk [vmem:[#allocation5 + $0x78] sm:$0xff] %vm1806_vm2, %v1805_v15 }
 0x45d PF: > { %p2366_p3 = scmp.ne.s32.totalorder %s2849_s21, 1 }
 0x45f   : > { %1826 = sbr.rel (%p2366_p3) target bundleno = 1284 (0x504), region = 56 }
 0x464   : > { %v1829_v35 = vld [vmem:[#allocation5 + $0x10] sm:$0xff]  ;;  %v1827_v6 = vld [vmem:[#allocation5] sm:$0xff]  ;;  %v2875_v28 = vmov 0   ;;  %v1830_v20 = vld [vmem:[#allocation5 + $0x18] sm:$0xff] }
 0x465   : > { %2798 = vset.pattern.permute.xlu1 %v2875_v28  ;;  %2797 = vset.pattern.permute.xlu0 %v2875_v28  ;;  %v1828_v8 = vld [vmem:[#allocation5 + $0x8] sm:$0xff]  ;;  %v1831_v32 = vld [vmem:[#allocation5 + $0x20] sm:$0xff]  ;;  %v1834_v14 = vld [vmem:[#allocation5 + $0x38] sm:$0xff] }
 0x466   : > { %1855 = vperm.xlu1 %2798, %v1829_v35   ;;  %1845 = vperm.xlu0 %2797, %v1827_v6   ;;  %v1832_v22 = vld [vmem:[#allocation5 + $0x28] sm:$0xff]  ;;  %v1833_v9 = vld [vmem:[#allocation5 + $0x30] sm:$0xff]  ;;  %v1835_v60 = vld [vmem:[#allocation5 + $0x40] sm:$0xff] }
 0x467   : > { %v1836_v41 = vld [vmem:[#allocation5 + $0x48] sm:$0xff]  ;;  %v1838_v10 = vld [vmem:[#allocation5 + $0x58] sm:$0xff]  ;;  %v1837_v12 = vld [vmem:[#allocation5 + $0x50] sm:$0xff] }
 0x468   : > { %v1840_v45 = vld [vmem:[#allocation5 + $0x68] sm:$0xff]  ;;  %v1839_v57 = vld [vmem:[#allocation5 + $0x60] sm:$0xff]  ;;  %v1842_v13 = vld [vmem:[#allocation5 + $0x78] sm:$0xff] }
 0x469   : > { %v1841_v30 = vld [vmem:[#allocation5 + $0x70] sm:$0xff]  ;;  %v4327_v49 = vld [vmem:[#allocation12_spill] sm:$0xff]  ;;  %v4329_v56 = vld [vmem:[#allocation7_spill] sm:$0xff] }
 0x46a   : > { %1860 = vperm.xlu1 %2798, %v1830_v20   ;;  %1850 = vperm.xlu0 %2797, %v1828_v8   ;;  %v4328_v2 = vld [vmem:[#allocation13_spill] sm:$0xff]  ;;  %v4331_v55 = vld [vmem:[#allocation8_spill] sm:$0xff]  ;;  %v4332_v5 = vld [vmem:[#allocation14_spill] sm:$0xff] }
 0x46b   : > { %v4330_v17 = vld [vmem:[#allocation9_spill] sm:$0xff]  ;;  %v4333_v4 = vld [vmem:[#allocation15_spill] sm:$0xff]  ;;  %v4334_v21 = vld [vmem:[#allocation10_spill] sm:$0xff] }
 0x46c   : > { %v4335_v3 = vld [vmem:[#allocation11_spill] sm:$0xff]  ;;  %v4337_v47 = vld [vmem:[#allocation22_spill] sm:$0xff]  ;;  %v4338_v36 = vld [vmem:[#allocation21_spill] sm:$0xff] }
 0x46d   : > { %v4339_v15 = vld [vmem:[#allocation23_spill] sm:$0xff]  ;;  %v4340_v6 = vld [vmem:[#allocation16_spill] sm:$0xff]  ;;  %v4341_v20 = vld [vmem:[#allocation18_spill] sm:$0xff] }
 0x46e   : > { %1870 = vperm.xlu1 %2798, %v1832_v22   ;;  %1865 = vperm.xlu0 %2797, %v1831_v32   ;;  %v4342_v22 = vld [vmem:[#allocation17_spill] sm:$0xff] }
 0x472   : > { %1880 = vperm.xlu1 %2798, %v1834_v14   ;;  %1875 = vperm.xlu0 %2797, %v1833_v9   ;;  %v4343_v14 = vld [vmem:[#allocation19_spill] sm:$0xff] }
 0x476   : > { %1890 = vperm.xlu1 %2798, %v1836_v41   ;;  %1885 = vperm.xlu0 %2797, %v1835_v60  }
 0x47a   : > { %1900 = vperm.xlu1 %2798, %v1838_v10   ;;  %1895 = vperm.xlu0 %2797, %v1837_v12  }
 0x47e   : > { %1910 = vperm.xlu1 %2798, %v1840_v45   ;;  %1905 = vperm.xlu0 %2797, %v1839_v57  }
 0x482   : > { %1920 = vperm.xlu1 %2798, %v1842_v13   ;;  %1915 = vperm.xlu0 %2797, %v1841_v30   ;;  %v4344_v13 = vld [vmem:[#allocation24_spill] sm:$0xff] }
 0x4e1   : > { %v1856_v26 = vpop.permute.xlu1 %1855  ;;  %v1846_v53 = vpop.permute.xlu0 %1845 }
 0x4e2   : > { %v1931_v42 = vsub.f32 %v4327_v49, %v1856_v26  ;;  %v1932_v40 = vsub.f32 %v4328_v2, %v1856_v26  ;;  %v1933_v31 = vsub.f32 %v3158_v50, %v1856_v26  ;;  %v1934_v52 = vsub.f32 %v3164_v54, %v1856_v26  ;;  %v4345_v26 = vld [vmem:[#allocation25_spill] sm:$0xff]  ;;  %v4348_v2 = vld [vmem:[#allocation31_spill] sm:$0xff] }
 0x4e3   : > { %v1923_v43 = vsub.f32 %v4329_v56, %v1846_v53  ;;  %v1924_v1 = vsub.f32 %v4330_v17, %v1846_v53  ;;  %v1925_v16 = vsub.f32 %v4331_v55, %v1846_v53  ;;  %v1926_v18 = vsub.f32 %v3140_v38, %v1846_v53  ;;  %v4350_v56 = vld [vmem:[#allocation26_spill] sm:$0xff]  ;;  %v4351_v17 = vld [vmem:[#allocation28_spill] sm:$0xff]  ;;  %v4352_v55 = vld [vmem:[#allocation27_spill] sm:$0xff] }
 0x4e4   : > { %1995 = vst [vmem:[%s2992_s9 + $0x40] sm:$0xff] %v1931_v42  ;;  %1996 = vst [vmem:[%s2992_s9 + $0x48] sm:$0xff] %v1932_v40 }
 0x4e5   : > { %1997 = vst [vmem:[%s2992_s9 + $0x50] sm:$0xff] %v1933_v31  ;;  %1998 = vst [vmem:[%s2992_s9 + $0x58] sm:$0xff] %v1934_v52  ;;  %v1861_v50 = vpop.permute.xlu1 %1860  ;;  %v1851_v54 = vpop.permute.xlu0 %1850  ;;  %v4349_v31 = vld [vmem:[#allocation33_spill] sm:$0xff] }
 0x4e6   : > { %1987 = vst [vmem:[%s2992_s9] sm:$0xff] %v1923_v43  ;;  %1988 = vst [vmem:[%s2992_s9 + $0x8] sm:$0xff] %v1924_v1  ;;  %v1935_v38 = vsub.f32 %v4332_v5, %v1861_v50  ;;  %v1936_v7 = vsub.f32 %v4333_v4, %v1861_v50  ;;  %v1937_v34 = vsub.f32 %v3170_v58, %v1861_v50 }
 0x4e7   : > { %1989 = vst [vmem:[%s2992_s9 + $0x10] sm:$0xff] %v1925_v16  ;;  %1990 = vst [vmem:[%s2992_s9 + $0x18] sm:$0xff] %v1926_v18  ;;  %v1938_v29 = vsub.f32 %v3176_v62, %v1861_v50  ;;  %v1927_v11 = vsub.f32 %v4334_v21, %v1851_v54  ;;  %v1928_v48 = vsub.f32 %v3149_v44, %v1851_v54  ;;  %v4336_v62 = vld [vmem:[#allocation20_spill] sm:$0xff]  ;;  %v4353_v18 = vld [vmem:[#allocation29_spill] sm:$0xff] }
 0x4e8   : > { %v1929_v59 = vsub.f32 %v4335_v3, %v1851_v54  ;;  %v1930_v61 = vsub.f32 %v3152_v46, %v1851_v54  ;;  %1999 = vst [vmem:[%s2992_s9 + $0x60] sm:$0xff] %v1935_v38  ;;  %2000 = vst [vmem:[%s2992_s9 + $0x68] sm:$0xff] %v1936_v7  ;;  %v4354_v38 = vld [vmem:[#allocation38_spill] sm:$0xff]  ;;  %v4355_v7 = vld [vmem:[#allocation40_spill] sm:$0xff] }
 0x4e9   : > { %2001 = vst [vmem:[%s2992_s9 + $0x70] sm:$0xff] %v1937_v34  ;;  %2002 = vst [vmem:[%s2992_s9 + $0x78] sm:$0xff] %v1938_v29  ;;  %v1871_v58 = vpop.permute.xlu1 %1870  ;;  %v1866_v44 = vpop.permute.xlu0 %1865  ;;  %v4356_v29 = vld [vmem:[#allocation39_spill] sm:$0xff]  ;;  %v4358_v3 = vld [vmem:[#allocation34_spill] sm:$0xff] }
 0x4ea   : > { %1991 = vst [vmem:[%s2992_s9 + $0x20] sm:$0xff] %v1927_v11  ;;  %1992 = vst [vmem:[%s2992_s9 + $0x28] sm:$0xff] %v1928_v48  ;;  %v1943_v46 = vsub.f32 %v4336_v62, %v1871_v58  ;;  %v1944_v0 = vsub.f32 %v4337_v47, %v1871_v58  ;;  %v1945_v24 = vsub.f32 %v4338_v36, %v1871_v58  ;;  %v4357_v11 = vld [vmem:[#allocation41_spill] sm:$0xff] }
 0x4eb   : > { %1993 = vst [vmem:[%s2992_s9 + $0x30] sm:$0xff] %v1929_v59  ;;  %1994 = vst [vmem:[%s2992_s9 + $0x38] sm:$0xff] %v1930_v61  ;;  %v1946_v35 = vsub.f32 %v4339_v15, %v1871_v58  ;;  %v1939_v28 = vsub.f32 %v4340_v6, %v1866_v44  ;;  %v1940_v8 = vsub.f32 %v4341_v20, %v1866_v44  ;;  %v4359_v61 = vld [vmem:[#allocation36_spill] sm:$0xff]  ;;  %v4363_v6 = vld [vmem:[#allocation47_spill] sm:$0xff] }
 0x4ec   : > { %v1941_v32 = vsub.f32 %v4342_v22, %v1866_v44  ;;  %v1942_v9 = vsub.f32 %v4343_v14, %v1866_v44  ;;  %2007 = vst [vmem:[%s2992_s9 + $0xa0] sm:$0xff] %v1943_v46  ;;  %2008 = vst [vmem:[%s2992_s9 + $0xa8] sm:$0xff] %v1944_v0  ;;  %v4360_v44 = vld [vmem:[#allocation35_spill] sm:$0xff]  ;;  %v4361_v46 = vld [vmem:[#allocation37_spill] sm:$0xff] }
 0x4ed   : > { %2009 = vst [vmem:[%s2992_s9 + $0xb0] sm:$0xff] %v1945_v24  ;;  %2010 = vst [vmem:[%s2992_s9 + $0xb8] sm:$0xff] %v1946_v35  ;;  %v1881_v41 = vpop.permute.xlu1 %1880  ;;  %v1876_v60 = vpop.permute.xlu0 %1875  ;;  %v4362_v24 = vld [vmem:[#allocation46_spill] sm:$0xff]  ;;  %v4364_v20 = vld [vmem:[#allocation48_spill] sm:$0xff] }
 0x4ee   : > { %2003 = vst [vmem:[%s2992_s9 + $0x80] sm:$0xff] %v1939_v28  ;;  %2004 = vst [vmem:[%s2992_s9 + $0x88] sm:$0xff] %v1940_v8  ;;  %v1951_v10 = vsub.f32 %v3215_v25, %v1881_v41  ;;  %v1952_v12 = vsub.f32 %v3221_v33, %v1881_v41  ;;  %v1953_v45 = vsub.f32 %v3218_v27, %v1881_v41  ;;  %v4347_v33 = vld [vmem:[#allocation32_spill] sm:$0xff]  ;;  %v4365_v22 = vld [vmem:[#allocation42_spill] sm:$0xff] }
 0x4ef   : > { %2005 = vst [vmem:[%s2992_s9 + $0x90] sm:$0xff] %v1941_v32  ;;  %2006 = vst [vmem:[%s2992_s9 + $0x98] sm:$0xff] %v1942_v9  ;;  %v1954_v57 = vsub.f32 %v3224_v37, %v1881_v41  ;;  %v1947_v30 = vsub.f32 %v4344_v13, %v1876_v60  ;;  %v1948_v53 = vsub.f32 %v4345_v26, %v1876_v60  ;;  %v4366_v14 = vld [vmem:[#allocation44_spill] sm:$0xff]  ;;  %v4367_v41 = vld [vmem:[#allocation43_spill] sm:$0xff] }
 0x4f0   : > { %v1949_v49 = vsub.f32 %v3206_v19, %v1876_v60  ;;  %v1950_v42 = vsub.f32 %v3212_v23, %v1876_v60  ;;  %2015 = vst [vmem:[%s2992_s9 + $0xe0] sm:$0xff] %v1951_v10  ;;  %2016 = vst [vmem:[%s2992_s9 + $0xe8] sm:$0xff] %v1952_v12  ;;  %v4346_v19 = vld [vmem:[#allocation30_spill] sm:$0xff]  ;;  %v4368_v10 = vld [vmem:[#allocation45_spill] sm:$0xff] }
 0x4f1   : > { %2017 = vst [vmem:[%s2992_s9 + $0xf0] sm:$0xff] %v1953_v45  ;;  %2018 = vst [vmem:[%s2992_s9 + $0xf8] sm:$0xff] %v1954_v57  ;;  %v1891_v25 = vpop.permute.xlu1 %1890  ;;  %v1886_v27 = vpop.permute.xlu0 %1885  ;;  %v4369_v57 = vld [vmem:[#allocation52_spill] sm:$0xff] }
 0x4f2   : > { %2011 = vst [vmem:[%s2992_s9 + $0xc0] sm:$0xff] %v1947_v30  ;;  %2012 = vst [vmem:[%s2992_s9 + $0xc8] sm:$0xff] %v1948_v53  ;;  %v1959_v23 = vsub.f32 %v4346_v19, %v1891_v25  ;;  %v1960_v37 = vsub.f32 %v4347_v33, %v1891_v25  ;;  %v1961_v40 = vsub.f32 %v4348_v2, %v1891_v25  ;;  %v4370_v30 = vld [vmem:[#allocation54_spill] sm:$0xff]  ;;  %v4371_v53 = vld [vmem:[#allocation53_spill] sm:$0xff] }
 0x4f3   : > { %2013 = vst [vmem:[%s2992_s9 + $0xd0] sm:$0xff] %v1949_v49  ;;  %2014 = vst [vmem:[%s2992_s9 + $0xd8] sm:$0xff] %v1950_v42  ;;  %v1962_v52 = vsub.f32 %v4349_v31, %v1891_v25  ;;  %v1955_v43 = vsub.f32 %v4350_v56, %v1886_v27  ;;  %v1956_v1 = vsub.f32 %v4351_v17, %v1886_v27  ;;  %v4372_v25 = vld [vmem:[#allocation49_spill] sm:$0xff] }
 0x4f4   : > { %v1957_v16 = vsub.f32 %v4352_v55, %v1886_v27  ;;  %v1958_v50 = vsub.f32 %v4353_v18, %v1886_v27  ;;  %2023 = vst [vmem:[%s2992_s9 + $0x120] sm:$0xff] %v1959_v23  ;;  %2024 = vst [vmem:[%s2992_s9 + $0x128] sm:$0xff] %v1960_v37  ;;  %v4373_v23 = vld [vmem:[#allocation50_spill] sm:$0xff]  ;;  %v4374_v37 = vld [vmem:[#allocation51_spill] sm:$0xff] }
 0x4f5   : > { %2025 = vst [vmem:[%s2992_s9 + $0x130] sm:$0xff] %v1961_v40  ;;  %2026 = vst [vmem:[%s2992_s9 + $0x138] sm:$0xff] %v1962_v52  ;;  %v1901_v54 = vpop.permute.xlu1 %1900  ;;  %v1896_v5 = vpop.permute.xlu0 %1895 }
 0x4f6   : > { %2019 = vst [vmem:[%s2992_s9 + $0x100] sm:$0xff] %v1955_v43  ;;  %2020 = vst [vmem:[%s2992_s9 + $0x108] sm:$0xff] %v1956_v1  ;;  %v1967_v4 = vsub.f32 %v4354_v38, %v1901_v54  ;;  %v1968_v34 = vsub.f32 %v4355_v7, %v1901_v54  ;;  %v1969_v21 = vsub.f32 %v4356_v29, %v1901_v54 }
 0x4f7   : > { %2021 = vst [vmem:[%s2992_s9 + $0x110] sm:$0xff] %v1957_v16  ;;  %2022 = vst [vmem:[%s2992_s9 + $0x118] sm:$0xff] %v1958_v50  ;;  %v1970_v48 = vsub.f32 %v4357_v11, %v1901_v54  ;;  %v1963_v59 = vsub.f32 %v4358_v3, %v1896_v5  ;;  %v1964_v58 = vsub.f32 %v4359_v61, %v1896_v5 }
 0x4f8   : > { %v1965_v62 = vsub.f32 %v4360_v44, %v1896_v5  ;;  %v1966_v47 = vsub.f32 %v4361_v46, %v1896_v5  ;;  %2031 = vst [vmem:[%s2992_s9 + $0x160] sm:$0xff] %v1967_v4  ;;  %2032 = vst [vmem:[%s2992_s9 + $0x168] sm:$0xff] %v1968_v34 }
 0x4f9   : > { %2033 = vst [vmem:[%s2992_s9 + $0x170] sm:$0xff] %v1969_v21  ;;  %2034 = vst [vmem:[%s2992_s9 + $0x178] sm:$0xff] %v1970_v48  ;;  %v1911_v0 = vpop.permute.xlu1 %1910  ;;  %v1906_v36 = vpop.permute.xlu0 %1905 }
 0x4fa   : > { %2027 = vst [vmem:[%s2992_s9 + $0x140] sm:$0xff] %v1963_v59  ;;  %2028 = vst [vmem:[%s2992_s9 + $0x148] sm:$0xff] %v1964_v58  ;;  %v1975_v15 = vsub.f32 %v4362_v24, %v1911_v0  ;;  %v1976_v35 = vsub.f32 %v3293_v63, %v1911_v0  ;;  %v1977_v28 = vsub.f32 %v4363_v6, %v1911_v0 }
 0x4fb   : > { %2029 = vst [vmem:[%s2992_s9 + $0x150] sm:$0xff] %v1965_v62  ;;  %2030 = vst [vmem:[%s2992_s9 + $0x158] sm:$0xff] %v1966_v47  ;;  %v1978_v8 = vsub.f32 %v4364_v20, %v1911_v0  ;;  %v1971_v32 = vsub.f32 %v4365_v22, %v1906_v36  ;;  %v1972_v9 = vsub.f32 %v4366_v14, %v1906_v36 }
 0x4fc   : > { %v1973_v60 = vsub.f32 %v4367_v41, %v1906_v36  ;;  %v1974_v12 = vsub.f32 %v4368_v10, %v1906_v36  ;;  %2039 = vst [vmem:[%s2992_s9 + $0x1a0] sm:$0xff] %v1975_v15  ;;  %2040 = vst [vmem:[%s2992_s9 + $0x1a8] sm:$0xff] %v1976_v35 }
 0x4fd   : > { %2041 = vst [vmem:[%s2992_s9 + $0x1b0] sm:$0xff] %v1977_v28  ;;  %2042 = vst [vmem:[%s2992_s9 + $0x1b8] sm:$0xff] %v1978_v8  ;;  %v1921_v63 = vpop.permute.xlu1 %1920  ;;  %v1916_v45 = vpop.permute.xlu0 %1915 }
 0x4fe   : > { %2035 = vst [vmem:[%s2992_s9 + $0x180] sm:$0xff] %v1971_v32  ;;  %2036 = vst [vmem:[%s2992_s9 + $0x188] sm:$0xff] %v1972_v9  ;;  %v1983_v13 = vsub.f32 %v4369_v57, %v1921_v63  ;;  %v1984_v26 = vsub.f32 %v4370_v30, %v1921_v63  ;;  %v1985_v49 = vsub.f32 %v4371_v53, %v1921_v63 }
 0x4ff   : > { %2037 = vst [vmem:[%s2992_s9 + $0x190] sm:$0xff] %v1973_v60  ;;  %2038 = vst [vmem:[%s2992_s9 + $0x198] sm:$0xff] %v1974_v12  ;;  %v1986_v42 = vsub.f32 %v3320_v51, %v1921_v63  ;;  %v1979_v27 = vsub.f32 %v4372_v25, %v1916_v45  ;;  %v1980_v19 = vsub.f32 %v3305_v39, %v1916_v45 }
 0x500   : > { %v1981_v33 = vsub.f32 %v4373_v23, %v1916_v45  ;;  %v1982_v2 = vsub.f32 %v4374_v37, %v1916_v45  ;;  %2047 = vst [vmem:[%s2992_s9 + $0x1e0] sm:$0xff] %v1983_v13  ;;  %2048 = vst [vmem:[%s2992_s9 + $0x1e8] sm:$0xff] %v1984_v26 }
 0x501   : > { %2049 = vst [vmem:[%s2992_s9 + $0x1f0] sm:$0xff] %v1985_v49  ;;  %2050 = vst [vmem:[%s2992_s9 + $0x1f8] sm:$0xff] %v1986_v42 }
 0x502   : > { %2043 = vst [vmem:[%s2992_s9 + $0x1c0] sm:$0xff] %v1979_v27  ;;  %2044 = vst [vmem:[%s2992_s9 + $0x1c8] sm:$0xff] %v1980_v19 }
 0x503   : > { %2045 = vst [vmem:[%s2992_s9 + $0x1d0] sm:$0xff] %v1981_v33  ;;  %2046 = vst [vmem:[%s2992_s9 + $0x1d8] sm:$0xff] %v1982_v2 }
 0x504 PF: > { %2057 = sbr.rel (!%p2969_p6) target bundleno = 1323 (0x52b), region = 60  ;;  %s2390_s16 = sshll.u32 (%p2969_p6), %s2853_s22, 7  ;;  %v2077_v39 = vld [vmem:[%s2992_s9] sm:$0xff] (%p2969_p6)  ;;  %v2079_v51 = vld [vmem:[%s2992_s9 + $0x8] sm:$0xff] (%p2969_p6)  ;;  %v2081_v40 = vld [vmem:[%s2992_s9 + $0x10] sm:$0xff] (%p2969_p6) }
 0x505   : > { %s2058_s7 = smul.u32 (%p2969_p6), %s2845_s20, %s2849_s21  ;;  %v2083_v31 = vld [vmem:[%s2992_s9 + $0x18] sm:$0xff] (%p2969_p6)  ;;  %v2085_v52 = vld [vmem:[%s2992_s9 + $0x20] sm:$0xff] (%p2969_p6)  ;;  %v2087_v56 = vld [vmem:[%s2992_s9 + $0x28] sm:$0xff] (%p2969_p6) }
 0x506   : > { %v2089_v43 = vld [vmem:[%s2992_s9 + $0x30] sm:$0xff] (%p2969_p6)  ;;  %v2091_v17 = vld [vmem:[%s2992_s9 + $0x38] sm:$0xff] (%p2969_p6)  ;;  %v2093_v1 = vld [vmem:[%s2992_s9 + $0x40] sm:$0xff] (%p2969_p6) }
 0x507   : > { %s2369_s8 = sshll.u32 (%p2969_p6), %s2058_s7, 2  ;;  %v2095_v55 = vld [vmem:[%s2992_s9 + $0x48] sm:$0xff] (%p2969_p6)  ;;  %v2097_v16 = vld [vmem:[%s2992_s9 + $0x50] sm:$0xff] (%p2969_p6)  ;;  %v2099_v18 = vld [vmem:[%s2992_s9 + $0x58] sm:$0xff] (%p2969_p6) }
 0x508   : > { %s2062_s17 = sadd.s32 (%p2969_p6), %s2390_s16, %s2369_s8  ;;  %v2101_v50 = vld [vmem:[%s2992_s9 + $0x60] sm:$0xff] (%p2969_p6)  ;;  %v2103_v54 = vld [vmem:[%s2992_s9 + $0x68] sm:$0xff] (%p2969_p6)  ;;  %v2105_v5 = vld [vmem:[%s2992_s9 + $0x70] sm:$0xff] (%p2969_p6) }
 0x509   : > { %s2371_s20 = sshll.u32 %s2062_s17, 3  ;;  %v2107_v38 = vld [vmem:[%s2992_s9 + $0x78] sm:$0xff]  ;;  %v2109_v4 = vld [vmem:[%s2992_s9 + $0x80] sm:$0xff]  ;;  %v2111_v7 = vld [vmem:[%s2992_s9 + $0x88] sm:$0xff] }
 0x50a   : > { %s3951_s29 = scalar_lea.vmem %s4098_s5, %s2371_s20  ;;  %v2113_v34 = vld [vmem:[%s2992_s9 + $0x90] sm:$0xff]  ;;  %v2115_v29 = vld [vmem:[%s2992_s9 + $0x98] sm:$0xff]  ;;  %v2117_v21 = vld [vmem:[%s2992_s9 + $0xa0] sm:$0xff] }
 0x50b   : > { %2078 = vst [vmem:[%s3951_s29] sm:$0xff] %v2077_v39  ;;  %2080 = vst [vmem:[%s3951_s29 + $0x8] sm:$0xff] %v2079_v51  ;;  %v2119_v11 = vld [vmem:[%s2992_s9 + $0xa8] sm:$0xff]  ;;  %v2121_v48 = vld [vmem:[%s2992_s9 + $0xb0] sm:$0xff] }
 0x50c   : > { %2082 = vst [vmem:[%s3951_s29 + $0x10] sm:$0xff] %v2081_v40  ;;  %2084 = vst [vmem:[%s3951_s29 + $0x18] sm:$0xff] %v2083_v31  ;;  %v2123_v3 = vld [vmem:[%s2992_s9 + $0xb8] sm:$0xff]  ;;  %v2125_v59 = vld [vmem:[%s2992_s9 + $0xc0] sm:$0xff] }
 0x50d   : > { %2086 = vst [vmem:[%s3951_s29 + $0x40] sm:$0xff] %v2085_v52  ;;  %2088 = vst [vmem:[%s3951_s29 + $0x48] sm:$0xff] %v2087_v56  ;;  %v2127_v61 = vld [vmem:[%s2992_s9 + $0xc8] sm:$0xff]  ;;  %v2129_v58 = vld [vmem:[%s2992_s9 + $0xd0] sm:$0xff] }
 0x50e   : > { %2090 = vst [vmem:[%s3951_s29 + $0x50] sm:$0xff] %v2089_v43  ;;  %2092 = vst [vmem:[%s3951_s29 + $0x58] sm:$0xff] %v2091_v17  ;;  %v2131_v44 = vld [vmem:[%s2992_s9 + $0xd8] sm:$0xff]  ;;  %v2133_v62 = vld [vmem:[%s2992_s9 + $0xe0] sm:$0xff] }
 0x50f   : > { %2094 = vst [vmem:[%s3951_s29 + $0x80] sm:$0xff] %v2093_v1  ;;  %2096 = vst [vmem:[%s3951_s29 + $0x88] sm:$0xff] %v2095_v55  ;;  %v2135_v46 = vld [vmem:[%s2992_s9 + $0xe8] sm:$0xff]  ;;  %v2137_v47 = vld [vmem:[%s2992_s9 + $0xf0] sm:$0xff] }
 0x510   : > { %2098 = vst [vmem:[%s3951_s29 + $0x90] sm:$0xff] %v2097_v16  ;;  %2100 = vst [vmem:[%s3951_s29 + $0x98] sm:$0xff] %v2099_v18  ;;  %v2139_v0 = vld [vmem:[%s2992_s9 + $0xf8] sm:$0xff]  ;;  %v2141_v36 = vld [vmem:[%s2992_s9 + $0x100] sm:$0xff] }
 0x511   : > { %2102 = vst [vmem:[%s3951_s29 + $0xc0] sm:$0xff] %v2101_v50  ;;  %2104 = vst [vmem:[%s3951_s29 + $0xc8] sm:$0xff] %v2103_v54  ;;  %v2143_v24 = vld [vmem:[%s2992_s9 + $0x108] sm:$0xff]  ;;  %v2145_v15 = vld [vmem:[%s2992_s9 + $0x110] sm:$0xff] }
 0x512   : > { %2106 = vst [vmem:[%s3951_s29 + $0xd0] sm:$0xff] %v2105_v5  ;;  %2108 = vst [vmem:[%s3951_s29 + $0xd8] sm:$0xff] %v2107_v38  ;;  %v2147_v35 = vld [vmem:[%s2992_s9 + $0x118] sm:$0xff]  ;;  %v2149_v6 = vld [vmem:[%s2992_s9 + $0x120] sm:$0xff] }
 0x513   : > { %2110 = vst [vmem:[%s3951_s29 + $0x100] sm:$0xff] %v2109_v4  ;;  %2112 = vst [vmem:[%s3951_s29 + $0x108] sm:$0xff] %v2111_v7  ;;  %v2151_v28 = vld [vmem:[%s2992_s9 + $0x128] sm:$0xff]  ;;  %v2153_v20 = vld [vmem:[%s2992_s9 + $0x130] sm:$0xff] }
 0x514   : > { %2114 = vst [vmem:[%s3951_s29 + $0x110] sm:$0xff] %v2113_v34  ;;  %2116 = vst [vmem:[%s3951_s29 + $0x118] sm:$0xff] %v2115_v29  ;;  %v2155_v8 = vld [vmem:[%s2992_s9 + $0x138] sm:$0xff]  ;;  %v2157_v22 = vld [vmem:[%s2992_s9 + $0x140] sm:$0xff] }
 0x515   : > { %2118 = vst [vmem:[%s3951_s29 + $0x140] sm:$0xff] %v2117_v21  ;;  %2120 = vst [vmem:[%s3951_s29 + $0x148] sm:$0xff] %v2119_v11  ;;  %v2159_v32 = vld [vmem:[%s2992_s9 + $0x148] sm:$0xff]  ;;  %v2161_v14 = vld [vmem:[%s2992_s9 + $0x150] sm:$0xff] }
 0x516   : > { %2122 = vst [vmem:[%s3951_s29 + $0x150] sm:$0xff] %v2121_v48  ;;  %2124 = vst [vmem:[%s3951_s29 + $0x158] sm:$0xff] %v2123_v3  ;;  %v2163_v9 = vld [vmem:[%s2992_s9 + $0x158] sm:$0xff]  ;;  %v2165_v41 = vld [vmem:[%s2992_s9 + $0x160] sm:$0xff] }
 0x517   : > { %2126 = vst [vmem:[%s3951_s29 + $0x180] sm:$0xff] %v2125_v59  ;;  %2128 = vst [vmem:[%s3951_s29 + $0x188] sm:$0xff] %v2127_v61  ;;  %v2167_v60 = vld [vmem:[%s2992_s9 + $0x168] sm:$0xff]  ;;  %v2169_v10 = vld [vmem:[%s2992_s9 + $0x170] sm:$0xff] }
 0x518   : > { %2130 = vst [vmem:[%s3951_s29 + $0x190] sm:$0xff] %v2129_v58  ;;  %2132 = vst [vmem:[%s3951_s29 + $0x198] sm:$0xff] %v2131_v44  ;;  %v2171_v12 = vld [vmem:[%s2992_s9 + $0x178] sm:$0xff]  ;;  %v2173_v63 = vld [vmem:[%s2992_s9 + $0x180] sm:$0xff] }
 0x519   : > { %2134 = vst [vmem:[%s3951_s29 + $0x1c0] sm:$0xff] %v2133_v62  ;;  %2136 = vst [vmem:[%s3951_s29 + $0x1c8] sm:$0xff] %v2135_v46  ;;  %v2175_v45 = vld [vmem:[%s2992_s9 + $0x188] sm:$0xff]  ;;  %v2177_v57 = vld [vmem:[%s2992_s9 + $0x190] sm:$0xff] }
 0x51a   : > { %2138 = vst [vmem:[%s3951_s29 + $0x1d0] sm:$0xff] %v2137_v47  ;;  %2140 = vst [vmem:[%s3951_s29 + $0x1d8] sm:$0xff] %v2139_v0  ;;  %v2179_v13 = vld [vmem:[%s2992_s9 + $0x198] sm:$0xff]  ;;  %v2181_v30 = vld [vmem:[%s2992_s9 + $0x1a0] sm:$0xff] }
 0x51b   : > { %2142 = vst [vmem:[%s3951_s29 + $0x200] sm:$0xff] %v2141_v36  ;;  %2144 = vst [vmem:[%s3951_s29 + $0x208] sm:$0xff] %v2143_v24  ;;  %v2183_v26 = vld [vmem:[%s2992_s9 + $0x1a8] sm:$0xff]  ;;  %v2185_v53 = vld [vmem:[%s2992_s9 + $0x1b0] sm:$0xff] }
 0x51c   : > { %2146 = vst [vmem:[%s3951_s29 + $0x210] sm:$0xff] %v2145_v15  ;;  %2148 = vst [vmem:[%s3951_s29 + $0x218] sm:$0xff] %v2147_v35  ;;  %v2187_v49 = vld [vmem:[%s2992_s9 + $0x1b8] sm:$0xff]  ;;  %v2189_v42 = vld [vmem:[%s2992_s9 + $0x1c0] sm:$0xff] }
 0x51d   : > { %2150 = vst [vmem:[%s3951_s29 + $0x240] sm:$0xff] %v2149_v6  ;;  %2152 = vst [vmem:[%s3951_s29 + $0x248] sm:$0xff] %v2151_v28  ;;  %v2191_v25 = vld [vmem:[%s2992_s9 + $0x1c8] sm:$0xff]  ;;  %v2193_v27 = vld [vmem:[%s2992_s9 + $0x1d0] sm:$0xff] }
 0x51e   : > { %2154 = vst [vmem:[%s3951_s29 + $0x250] sm:$0xff] %v2153_v20  ;;  %2156 = vst [vmem:[%s3951_s29 + $0x258] sm:$0xff] %v2155_v8  ;;  %v2195_v19 = vld [vmem:[%s2992_s9 + $0x1d8] sm:$0xff]  ;;  %v2197_v23 = vld [vmem:[%s2992_s9 + $0x1e0] sm:$0xff] }
 0x51f   : > { %2158 = vst [vmem:[%s3951_s29 + $0x280] sm:$0xff] %v2157_v22  ;;  %2160 = vst [vmem:[%s3951_s29 + $0x288] sm:$0xff] %v2159_v32  ;;  %v2199_v33 = vld [vmem:[%s2992_s9 + $0x1e8] sm:$0xff]  ;;  %v2201_v37 = vld [vmem:[%s2992_s9 + $0x1f0] sm:$0xff] }
 0x520   : > { %2162 = vst [vmem:[%s3951_s29 + $0x290] sm:$0xff] %v2161_v14  ;;  %2164 = vst [vmem:[%s3951_s29 + $0x298] sm:$0xff] %v2163_v9  ;;  %v2203_v2 = vld [vmem:[%s2992_s9 + $0x1f8] sm:$0xff] }
 0x521   : > { %2166 = vst [vmem:[%s3951_s29 + $0x2c0] sm:$0xff] %v2165_v41  ;;  %2168 = vst [vmem:[%s3951_s29 + $0x2c8] sm:$0xff] %v2167_v60 }
 0x522   : > { %2170 = vst [vmem:[%s3951_s29 + $0x2d0] sm:$0xff] %v2169_v10  ;;  %2172 = vst [vmem:[%s3951_s29 + $0x2d8] sm:$0xff] %v2171_v12 }
 0x523   : > { %2174 = vst [vmem:[%s3951_s29 + $0x300] sm:$0xff] %v2173_v63  ;;  %2176 = vst [vmem:[%s3951_s29 + $0x308] sm:$0xff] %v2175_v45 }
 0x524   : > { %2178 = vst [vmem:[%s3951_s29 + $0x310] sm:$0xff] %v2177_v57  ;;  %2180 = vst [vmem:[%s3951_s29 + $0x318] sm:$0xff] %v2179_v13 }
 0x525   : > { %2182 = vst [vmem:[%s3951_s29 + $0x340] sm:$0xff] %v2181_v30  ;;  %2184 = vst [vmem:[%s3951_s29 + $0x348] sm:$0xff] %v2183_v26 }
 0x526   : > { %2186 = vst [vmem:[%s3951_s29 + $0x350] sm:$0xff] %v2185_v53  ;;  %2188 = vst [vmem:[%s3951_s29 + $0x358] sm:$0xff] %v2187_v49 }
 0x527   : > { %2190 = vst [vmem:[%s3951_s29 + $0x380] sm:$0xff] %v2189_v42  ;;  %2192 = vst [vmem:[%s3951_s29 + $0x388] sm:$0xff] %v2191_v25 }
 0x528   : > { %2194 = vst [vmem:[%s3951_s29 + $0x390] sm:$0xff] %v2193_v27  ;;  %2196 = vst [vmem:[%s3951_s29 + $0x398] sm:$0xff] %v2195_v19 }
 0x529   : > { %2198 = vst [vmem:[%s3951_s29 + $0x3c0] sm:$0xff] %v2197_v23  ;;  %2200 = vst [vmem:[%s3951_s29 + $0x3c8] sm:$0xff] %v2199_v33 }
 0x52a   : > { %2202 = vst [vmem:[%s3951_s29 + $0x3d0] sm:$0xff] %v2201_v37  ;;  %2204 = vst [vmem:[%s3951_s29 + $0x3d8] sm:$0xff] %v2203_v2 }
 0x52b PF: > { %s15_s26 = sadd.s32 1, %s2869_s26   ;;  %s4375_s18 = smov %s2841_s19 }
 0x52c   : > { %p12_p4 = scmp.ge.s32.totalorder %s15_s26, 10   ;;  %s4376_s19 = smov %s2979_s13 }
 0x52d   : > { %s4377_s20 = smov %s2857_s23  ;;  %s4378_s21 = smov %s2861_s24 }
 0x52e   : > { %s4379_s22 = smov %s2865_s25  ;;  %s4380_s23 = smov %s4384_s27 }
 0x52f   : > { %s4381_s24 = smov %s4388_s28  ;;  %s4382_s25 = smov %s4392_s30 }
 0x530   :  { %14 = sbr.rel (!%p12_p4) target bundleno = 5 (0x5), region = 111 }

</bundles_post_ra>
